<compile_context>
chip_gen: v7x
topology: tpu7x:2x2x1
jax: 0.10.0
libtpu: 0.0.40
codegen_flags: <defaults>
</compile_context>

<pallas_src>
import math

import jax
import jax.numpy as jnp
from jax import lax
from jax.experimental import pallas as pl
from jax.experimental.pallas import tpu as pltpu


def _ceil_to(x, m):
    return -(-x // m) * m


def _qgcn_last_kernel(a_ref, x0_ref, x1t_ref, w_ref, b_ref, o_ref):
    # Per-step tile shapes:
    #   a_ref  : (TB, N, N)     bf16
    #   x0_ref : (TB, N, D0)    bf16
    #   x1t_ref: (TB, D1, N)    bf16   (x1 pre-transposed in the wrapper)
    #   w_ref  : (D1, out, D0)  bf16   (shared across grid steps)
    #   b_ref  : (out, 1)       f32    (shared)
    #   o_ref  : (out, TB)             (lane-dense output; batch on lanes)
    a = a_ref[...]
    x0 = x0_ref[...]
    x1t = x1t_ref[...]
    cdt = a.dtype  # compute (MXU operand) dtype, bf16 by default

    # x1^T @ A per batch row -> (TB, D1, N).  bf16 operands, f32 accumulation.
    t1 = jnp.einsum("bdn,bnm->bdm", x1t, a, preferred_element_type=jnp.float32)

    # (x1^T A) @ x0 per batch row -> (TB, D1, D0).
    t2 = jnp.einsum(
        "bdm,bmk->bdk", t1.astype(cdt), x0, preferred_element_type=jnp.float32
    )

    # Flattened right linear with a lane-dense result:
    #   out[o, b] = sum_{d,k} W[o, d*D0 + k] * t2[b, d, k] + bias[o]
    # where w_ref[d, o, k] == W[o, d*D0 + k].
    # dot_general: batch over D1, contract D0, W as LHS -> (D1, out, TB),
    # then a small VPU sum over D1.  (Collapsing D1 into the contraction would
    # drop the intermediate but needs an MLIR check for relayouts.)
    r = lax.dot_general(
        w_ref[...],
        t2.astype(cdt),
        (((2,), (2,)), ((0,), (1,))),
        preferred_element_type=jnp.float32,
    )  # (D1, out, TB)
    acc = jnp.sum(r, axis=0) + b_ref[...]  # (out, TB), f32
    o_ref[...] = acc.astype(o_ref.dtype)


def _per_batch_vmem_bytes(N, D0, D1, out_dim, itemsize):
    # Conservative padded VMEM footprint of one batch row: double-buffered
    # inputs plus the f32 intermediates produced in the body.
    sub_in = 16 if itemsize == 2 else 8
    a_b = _ceil_to(N, sub_in) * _ceil_to(N, 128) * itemsize
    x0_b = _ceil_to(N, sub_in) * _ceil_to(D0, 128) * itemsize
    x1_b = _ceil_to(D1, sub_in) * _ceil_to(N, 128) * itemsize
    t1_b = _ceil_to(D1, 8) * _ceil_to(N, 128) * 4
    t2_b = _ceil_to(D1, 8) * _ceil_to(D0, 128) * 4
    # bf16 copies of t1/t2 fed back to the MXU + (D1, out, TB) partials.
    extra = (t1_b + t2_b) // 2 + _ceil_to(D1, 8) * _ceil_to(out_dim, 8) * 4
    return 2 * (a_b + x0_b + x1_b) + (t1_b + t2_b) + extra


def _choose_tb(B, N, D0, D1, out_dim, itemsize, vmem_budget_bytes):
    # The lane-dense (out, TB) output block requires TB == B or TB % 128 == 0.
    if B <= 128:
        return B  # one dense step; total DMA is tiny, nothing useful to pipeline
    per_b = max(1, _per_batch_vmem_bytes(N, D0, D1, out_dim, itemsize))
    cap = max(128, (vmem_budget_bytes // per_b) // 128 * 128)
    # Target >= 4 grid steps: overlaps DMA(i+1) with compute(i) and gives both
    # v7x TensorCores work via dimension_semantics=("parallel",).
    target = max(128, _ceil_to(pl.cdiv(B, 4), 128))
    return int(min(target, cap))


def qgcn_last_layer(
    A,
    x0,
    x1,
    w_right,
    b_right,
    *,
    compute_dtype=jnp.bfloat16,
    vmem_budget_bytes=40 * 1024 * 1024,
):
    """QGCNLastLayer.forward.
    A:(B,N,N)  x0:(B,N,D0)  x1:(B,N,D1)  w_right:(out, D1*D0)  b_right:(out,).
    Returns (B, out_dim)."""
    B, N, _ = A.shape
    D0 = x0.shape[-1]
    D1 = x1.shape[-1]
    out_dim = w_right.shape[0]
    assert w_right.shape[1] == D1 * D0
    out_dtype = x0.dtype
    itemsize = jnp.dtype(compute_dtype).itemsize

    # bf16 MXU operands (f32 accumulation inside the kernel).
    a_c = A.astype(compute_dtype)
    x0_c = x0.astype(compute_dtype)
    # x1 pre-transposed to (B, D1, N): small D1 on sublanes, N on lanes.
    x1t_c = jnp.transpose(x1, (0, 2, 1)).astype(compute_dtype)
    # (out, D1*D0) -> (D1, out, D0): D0 on the lane axis instead of out_dim.
    w3 = jnp.transpose(w_right.reshape(out_dim, D1, D0), (1, 0, 2)).astype(compute_dtype)
    b2 = b_right.reshape(out_dim, 1).astype(jnp.float32)

    TB = _choose_tb(B, N, D0, D1, out_dim, itemsize, vmem_budget_bytes)
    grid = (pl.cdiv(B, TB),)

    flops = B * (2 * D1 * N * N + 2 * D1 * N * D0 + 2 * D1 * D0 * out_dim)
    bytes_accessed = (
        itemsize * (B * (N * N + N * D0 + N * D1) + D1 * D0 * out_dim)
        + 4 * (out_dim + B * out_dim)
    )

    out_t = pl.pallas_call(
        _qgcn_last_kernel,
        out_shape=jax.ShapeDtypeStruct((out_dim, B), out_dtype),
        grid_spec=pltpu.PrefetchScalarGridSpec(
            num_scalar_prefetch=0,
            grid=grid,
            in_specs=[
                pl.BlockSpec((TB, N, N), lambda i: (i, 0, 0)),          # A
                pl.BlockSpec((TB, N, D0), lambda i: (i, 0, 0)),         # x0
                pl.BlockSpec((TB, D1, N), lambda i: (i, 0, 0)),         # x1^T
                pl.BlockSpec((D1, out_dim, D0), lambda i: (0, 0, 0)),   # W (shared)
                pl.BlockSpec((out_dim, 1), lambda i: (0, 0)),           # bias (shared)
            ],
            out_specs=pl.BlockSpec((out_dim, TB), lambda i: (0, i)),    # lane-dense
        ),
        compiler_params=pltpu.CompilerParams(
            # Batch-tile axis is independent across steps -> shards across the
            # 2 TensorCores on v7x; no-op on v5e/v6e.
            dimension_semantics=("parallel",),
            vmem_limit_bytes=48 * 1024 * 1024,
        ),
        cost_estimate=pl.CostEstimate(
            flops=flops, transcendentals=0, bytes_accessed=bytes_accessed
        ),
    )(a_c, x0_c, x1t_c, w3, b2)

    # (out, B) -> (B, out); tiny transpose outside the kernel.
    return out_t.T


def qgcn_last_layer_ref(A, x0, x1, w_right, b_right):
    x1_A = jnp.einsum("bnd,bnm->bdm", x1, A)          # x1.permute(0,2,1) @ A
    x1_A_x0 = jnp.einsum("bdm,bmk->bdk", x1_A, x0)    # (B, D1, D0)
    B = A.shape[0]
    flat = x1_A_x0.reshape(B, -1)
    return flat @ w_right.T + b_right


if __name__ == "__main__":
    # Shapes consistent with the module: right_in_dim * 100 == D1 * D0,
    # so D0 = 100 (the hard-coded "*100" in __init__), D1 = right_in_dim.
    B, N = 2, 16
    D0 = 100                 # x0 feature dim (the hard-coded 100)
    D1 = 4                   # right_in_dim
    out_dim = 8
    left_in_dim = 4

    key = jax.random.PRNGKey(0)
    k_a, k_x0, k_x1, k_wr, k_br, k_wl, k_bl = jax.random.split(key, 7)

    A = jax.random.normal(k_a, (B, N, N), jnp.float32)
    x0 = jax.random.normal(k_x0, (B, N, D0), jnp.float32)
    x1 = jax.random.normal(k_x1, (B, N, D1), jnp.float32)

    # Deterministic parameter init mirroring reset_parameters():
    stdv_r = 1.0 / math.sqrt(out_dim)
    w_right = jax.random.uniform(
        k_wr, (out_dim, D1 * D0), jnp.float32, minval=-stdv_r, maxval=stdv_r
    )
    b_bound = 1.0 / math.sqrt(D1 * D0)
    b_right = jax.random.uniform(
        k_br, (out_dim,), jnp.float32, minval=-b_bound, maxval=b_bound
    )
    # _left_linear exists in the module but is unused by forward(); parity only.
    _w_left = jax.random.uniform(k_wl, (1, left_in_dim), jnp.float32, minval=-1.0, maxval=1.0)
    _b_left = jax.random.uniform(k_bl, (1,), jnp.float32, minval=-1.0, maxval=1.0)

    out = jax.block_until_ready(qgcn_last_layer(A, x0, x1, w_right, b_right))
    ref = qgcn_last_layer_ref(A, x0, x1, w_right, b_right)
    assert out.shape == (B, out_dim)
    err = float(jnp.linalg.norm(out - ref) / (jnp.linalg.norm(ref) + 1e-12))
    assert err < 3e-2, f"relative error too large: {err}"

    # Secondary check: multi-step grid with a partial last batch tile
    # (B=300 -> TB=128, grid=(3,), last tile covers only 44 batch rows/lanes).
    B2 = 300
    k2a, k2x0, k2x1 = jax.random.split(jax.random.PRNGKey(1), 3)
    A2 = jax.random.normal(k2a, (B2, N, N), jnp.float32)
    x02 = jax.random.normal(k2x0, (B2, N, D0), jnp.float32)
    x12 = jax.random.normal(k2x1, (B2, N, D1), jnp.float32)
    out2 = jax.block_until_ready(qgcn_last_layer(A2, x02, x12, w_right, b_right))
    ref2 = qgcn_last_layer_ref(A2, x02, x12, w_right, b_right)
    assert out2.shape == (B2, out_dim)
    err2 = float(jnp.linalg.norm(out2 - ref2) / (jnp.linalg.norm(ref2) + 1e-12))
    assert err2 < 3e-2, f"relative error too large: {err2}"

    print("KERNEL_OK")
</pallas_src>

<mosaic_0001>
module attributes {stable_mosaic.version = 11 : i64} {
  func.func @_qgcn_last_kernel(%arg0: i32, %arg1: memref<2x16x16xbf16, #tpu.memory_space<vmem>>, %arg2: memref<2x16x100xbf16, #tpu.memory_space<vmem>>, %arg3: memref<2x4x16xbf16, #tpu.memory_space<vmem>>, %arg4: memref<4x8x100xbf16, #tpu.memory_space<vmem>>, %arg5: memref<8x1xf32, #tpu.memory_space<vmem>>, %arg6: memref<8x2xf32, #tpu.memory_space<vmem>>) attributes {dimension_semantics = [#tpu.dimension_semantics<parallel>], iteration_bounds = array<i64: 1>, scalar_prefetch = 0 : i64, scratch_operands = 0 : i64, tpu.core_type = #tpu.core_type<tc>, window_params = [{transform_indices = @transform_0, window_bounds = array<i64: 2, 16, 16>}, {transform_indices = @transform_1, window_bounds = array<i64: 2, 16, 100>}, {transform_indices = @transform_2, window_bounds = array<i64: 2, 4, 16>}, {pipeline_mode = #tpu.pipeline_mode<synchronous>, transform_indices = @transform_3, window_bounds = array<i64: 4, 8, 100>}, {pipeline_mode = #tpu.pipeline_mode<synchronous>, transform_indices = @transform_4, window_bounds = array<i64: 8, 1>}, {transform_indices = @transform_5, window_bounds = array<i64: 8, 2>}]} {
    %c0 = arith.constant 0 : index
    %c0_0 = arith.constant 0 : index
    %c0_1 = arith.constant 0 : index
    %0 = vector.load %arg1[%c0, %c0_0, %c0_1] : memref<2x16x16xbf16, #tpu.memory_space<vmem>>, vector<2x16x16xbf16>
    %c0_2 = arith.constant 0 : index
    %c0_3 = arith.constant 0 : index
    %c0_4 = arith.constant 0 : index
    %1 = vector.load %arg2[%c0_2, %c0_3, %c0_4] : memref<2x16x100xbf16, #tpu.memory_space<vmem>>, vector<2x16x100xbf16>
    %c0_5 = arith.constant 0 : index
    %c0_6 = arith.constant 0 : index
    %c0_7 = arith.constant 0 : index
    %2 = vector.load %arg3[%c0_5, %c0_6, %c0_7] : memref<2x4x16xbf16, #tpu.memory_space<vmem>>, vector<2x4x16xbf16>
    "tpu.trace_start"() <{level = 10 : i32, message = "bdn,bnm->bdm"}> : () -> ()
    %cst = arith.constant dense<0.000000e+00> : vector<2x4x16xf32>
    %3 = tpu.matmul %2, %0, %cst {dimension_numbers = #tpu.dot_dimension_numbers<[2], [1], [1], [2], [0, 0, 0, 1, 1, 2], [0], [0]>} : vector<2x4x16xbf16>, vector<2x16x16xbf16>, vector<2x4x16xf32> -> vector<2x4x16xf32>
    "tpu.trace_stop"() : () -> ()
    %4 = arith.truncf %3 : vector<2x4x16xf32> to vector<2x4x16xbf16>
    "tpu.trace_start"() <{level = 10 : i32, message = "bdm,bmk->bdk"}> : () -> ()
    %cst_8 = arith.constant dense<0.000000e+00> : vector<2x4x100xf32>
    %5 = tpu.matmul %4, %1, %cst_8 {dimension_numbers = #tpu.dot_dimension_numbers<[2], [1], [1], [2], [0, 0, 0, 1, 1, 2], [0], [0]>} : vector<2x4x16xbf16>, vector<2x16x100xbf16>, vector<2x4x100xf32> -> vector<2x4x100xf32>
    "tpu.trace_stop"() : () -> ()
    %c0_9 = arith.constant 0 : index
    %c0_10 = arith.constant 0 : index
    %c0_11 = arith.constant 0 : index
    %6 = vector.load %arg4[%c0_9, %c0_10, %c0_11] : memref<4x8x100xbf16, #tpu.memory_space<vmem>>, vector<4x8x100xbf16>
    %7 = arith.truncf %5 : vector<2x4x100xf32> to vector<2x4x100xbf16>
    %cst_12 = arith.constant dense<0.000000e+00> : vector<4x8x2xf32>
    %8 = tpu.matmul %6, %7, %cst_12 {dimension_numbers = #tpu.dot_dimension_numbers<[2], [2], [1], [0], [0, 0, 0, 1, 1, 0], [0], [1]>} : vector<4x8x100xbf16>, vector<2x4x100xbf16>, vector<4x8x2xf32> -> vector<4x8x2xf32>
    %cst_13 = arith.constant dense<0.000000e+00> : vector<8x2xf32>
    %9 = vector.multi_reduction <add>, %8, %cst_13 [0] : vector<4x8x2xf32> to vector<8x2xf32>
    %c0_14 = arith.constant 0 : index
    %c0_15 = arith.constant 0 : index
    %10 = vector.load %arg5[%c0_14, %c0_15] : memref<8x1xf32, #tpu.memory_space<vmem>>, vector<8x1xf32>
    %11 = vector.broadcast %10 : vector<8x1xf32> to vector<8x2xf32>
    %12 = arith.addf %9, %11 : vector<8x2xf32>
    %c0_16 = arith.constant 0 : index
    %c0_17 = arith.constant 0 : index
    %13 = vector.load %arg6[%c0_16, %c0_17] : memref<8x2xf32, #tpu.memory_space<vmem>>, vector<8x2xf32>
    tpu.vector_store %arg6[%c0_16, %c0_17], %12 {strides = array<i32>} : memref<8x2xf32, #tpu.memory_space<vmem>>, vector<8x2xf32>,
    return
  }
  func.func @transform_0(%arg0: i32) -> (i32, i32, i32) {
    %c0_i32 = arith.constant 0 : i32
    %c0_i32_0 = arith.constant 0 : i32
    %c0_i32_1 = arith.constant 0 : i32
    return %arg0, %c0_i32, %c0_i32_0 : i32, i32, i32
  }
  func.func @transform_1(%arg0: i32) -> (i32, i32, i32) {
    %c0_i32 = arith.constant 0 : i32
    %c0_i32_0 = arith.constant 0 : i32
    %c0_i32_1 = arith.constant 0 : i32
    return %arg0, %c0_i32, %c0_i32_0 : i32, i32, i32
  }
  func.func @transform_2(%arg0: i32) -> (i32, i32, i32) {
    %c0_i32 = arith.constant 0 : i32
    %c0_i32_0 = arith.constant 0 : i32
    %c0_i32_1 = arith.constant 0 : i32
    return %arg0, %c0_i32, %c0_i32_0 : i32, i32, i32
  }
  func.func @transform_3(%arg0: i32) -> (i32, i32, i32) {
    %c0_i32 = arith.constant 0 : i32
    %c0_i32_0 = arith.constant 0 : i32
    %c0_i32_1 = arith.constant 0 : i32
    %c0_i32_2 = arith.constant 0 : i32
    return %c0_i32, %c0_i32_0, %c0_i32_1 : i32, i32, i32
  }
  func.func @transform_4(%arg0: i32) -> (i32, i32) {
    %c0_i32 = arith.constant 0 : i32
    %c0_i32_0 = arith.constant 0 : i32
    %c0_i32_1 = arith.constant 0 : i32
    return %c0_i32, %c0_i32_0 : i32, i32
  }
  func.func @transform_5(%arg0: i32) -> (i32, i32) {
    %c0_i32 = arith.constant 0 : i32
    %c0_i32_0 = arith.constant 0 : i32
    return %c0_i32, %arg0 : i32, i32
  }
}

</mosaic_0001>

<bundles_post_ra>
// kernel: tpu_custom_call.1
= control target key start
LH: loop header
LB: loop body
LE: loop exit
PB: predicated region body
PF: predicated region fallthrough
CT: control target
= control target key end

     0   :  { %10 = vsyncpa [#allocation3], 0  ;;  %s5057_s0 = inlined_call_operand.hbm [shape: bf16[2,16,16], index: 0, kind: input, shape index: {}]   ;;  %s5058_s1 = inlined_call_operand.hbm [shape: bf16[2,16,100], index: 1, kind: input, shape index: {}]   ;;  %s5059_s2 = inlined_call_operand.vmem [shape: bf16[2,4,16], index: 2, kind: input, shape index: {}]   ;;  %s5060_s3 = inlined_call_operand.vmem [shape: bf16[4,8,100], index: 3, kind: input, shape index: {}]   ;;  %s5061_s4 = inlined_call_operand.vmem [shape: f32[8,1], index: 4, kind: input, shape index: {}]   ;;  %s5062_s5 = inlined_call_operand.vmem [shape: f32[8,2], index: 5, kind: output, shape index: {}]  }
   0x1   :  { %11 = vsyncpa [#allocation5], 0  ;;  %s4045_s18 = smov [#allocation2]   ;;  %s3997_s22 = scalar_lea.hbm %s5057_s0, 256 }
   0x2   :  { %s17_s19 = sshll.u32 %s4045_s18, 4  ;;  %p3998_p0 = scmp.ne.s32.totalorder %s5057_s0, %s3997_s22  ;;  %s18_s19 = int_to_ptr.vmem [resolvable:$true] %s17_s19 }
   0x3   :  { %p4001_p1 = scmp.lt.u32.totalorder %s3997_s22, %s5057_s0 }
   0x5   :  { %p4003_p2 = pnand %p4001_p1, %p3998_p0 }
   0x7   :  { %4006 = shalt.err (!%p4003_p2)
}
   0x8   :  { %s4007_s27 = scalar_lea.vmem %s18_s19, 256  ;;  %p4012_p4 = scmp.lt.s32.totalorder %s18_s19, %s18_s19 }
   0x9   :  { %p4008_p3 = scmp.ne.s32.totalorder %s18_s19, %s4007_s27  ;;  %p4013_p5 = scmp.lt.s32.totalorder %s4007_s27, %s4007_s27 }
   0xb   :  { %p4014_p6 = por %p4013_p5, %p4012_p4 }
   0xd   :  { %p4015_p7 = pnand %p4014_p6, %p4008_p3 }
   0xf   :  { %4018 = shalt.err (!%p4015_p7)
}
  0x10   :  { %s4046_s28 = smov 64   ;;  %s4047_s29 = smov 4  }
  0x11   :  { %23 = dma.hbm_to_vmem [thread:$0]  %s5057_s0, 256, %s18_s19, [#allocation3], %s4046_s28, %s4046_s28, %s4047_s29  }
  0x12   :  { %s4048_s7 = smov [#allocation4]   ;;  %s4019_s11 = scalar_lea.hbm %s5058_s1, 256 }
  0x13   :  { %s29_s8 = sshll.u32 %s4048_s7, 4  ;;  %p4020_p8 = scmp.ne.s32.totalorder %s5058_s1, %s4019_s11  ;;  %s30_s8 = int_to_ptr.vmem [resolvable:$true] %s29_s8 }
  0x14   :  { %p4023_p9 = scmp.lt.u32.totalorder %s4019_s11, %s5058_s1 }
  0x16   :  { %p4025_p10 = pnand %p4023_p9, %p4020_p8 }
  0x18   :  { %4028 = shalt.err (!%p4025_p10)
}
  0x19   :  { %s4029_s16 = scalar_lea.vmem %s30_s8, 256  ;;  %p4034_p12 = scmp.lt.s32.totalorder %s30_s8, %s30_s8 }
  0x1a   :  { %p4030_p11 = scmp.ne.s32.totalorder %s30_s8, %s4029_s16  ;;  %p4035_p13 = scmp.lt.s32.totalorder %s4029_s16, %s4029_s16 }
  0x1c   :  { %p4036_p0 = por %p4035_p13, %p4034_p12 }
  0x1e   :  { %p4037_p1 = pnand %p4036_p0, %p4030_p11 }
  0x20   :  { %4040 = shalt.err (!%p4037_p1)
}
  0x21   :  { %35 = dma.hbm_to_vmem [thread:$0]  %s5058_s1, 256, %s30_s8, [#allocation5], %s4046_s28, %s4046_s28, %s4047_s29  }
  0x22   :  { %4041 = dma.done.wait [#allocation3], 256  }
  0x23   :  { %4042 = vsyncadd [#allocation3], 4294967040 }
  0x24   :  { %4043 = dma.done.wait [#allocation5], 256  }
  0x25   :  { %4044 = vsyncadd [#allocation5], 4294967040  ;;  %v5063_v0 = vmov 0.0   ;;  %vm4050_vm0 = vmmov 0   ;;  %v3993_v1 = vld [vmem:[#allocation2] sm:$0xff]   ;;  %vm65_vm1 = vcmask 130048   ;;  %v300_v33 = vlaneseq }
  0x26   :  { %3886 = vmatprep.subr.bf16.mxu0 %v5063_v0  ;;  %3888 = vmatprep.mubr.msk.bf16.mxu0 %vm4050_vm0, %v5063_v0  ;;  %v57_v2 = vld [vmem:[%s5059_s2] sm:$0x3]  ;;  %v3994_v3 = vld [vmem:[#allocation2 + $0x8] sm:$0xff]   ;;  %v3995_v4 = vld [vmem:[#allocation4] sm:$0xff]   ;;  %v4051_v31 = vmov 1983009808  }
  0x27   :  { %3892 = vmatprep.subr.bf16.mxu1 %v5063_v0  ;;  %3894 = vmatprep.mubr.msk.bf16.mxu1 %vm4050_vm0, %v5063_v0  ;;  %v58_v5 = vld [vmem:[%s5059_s2 + $0x2] sm:$0x3]  ;;  %v3996_v6 = vld [vmem:[#allocation4 + $0x8] sm:$0xff]   ;;  %v298_v32 = vunpack.c.l.s4 %v4051_v31  ;;  %v301_v36 = vshrl.u32 %v300_v33, 7  ;;  %v4052_v37 = vmov 1934713408  }
  0x28   :  { %3887 = vmatpush3.bf16.msra.mxu0 %v3993_v1  ;;  %3893 = vmatpush3.bf16.msra.mxu1 %v3994_v3  ;;  %v313_v38 = vunpack.c.l.s4 %v4052_v37  ;;  %v4053_v40 = vmov 0   ;;  %vm3630_vm2 = vcmask 1041408   ;;  %vm3626_vm3 = vcmask 818176  }
  0x29   :  { %3898 = vmatprep.subr.bf16.mxu0 %v5063_v0  ;;  %3904 = vmatprep.subr.bf16.mxu1 %v5063_v0  ;;  %v299_v35 = vunpack.c.0.s8 %v298_v32  ;;  %vm3812_vm4 = vcmask 15360  }
  0x2a   :  { %v314_v43 = vunpack.c.0.s8 %v313_v38 }
  0x2b   :  { %3889 = vmatmul.mubr.msk.bf16.vlgmr.msra.gmra.mrb[0].mxu0 %vm65_vm1, %v57_v2  ;;  %3895 = vmatmul.mubr.msk.bf16.vlgmr.msra.gmra.mrb[0].mxu1 %vm65_vm1, %v58_v5  ;;  %v4145_v42 = vsub.s32 %v299_v35, %v301_v36 }
  0x2c   :  { %3899 = vmatpush3.bf16.msra.mxu0 %v3995_v4  ;;  %3900 = vmatprep.mubr.msk.bf16.mxu0 %vm4050_vm0, %v5063_v0  ;;  %v4150_v46 = vsub.s32 %v314_v43, %v301_v36 }
  0x2d   :  { %3910 = vmatprep.subr.bf16.mxu0 %v5063_v0  ;;  %3906 = vmatprep.mubr.msk.bf16.mxu1 %vm4050_vm0, %v5063_v0 }
  0x2e   :  { %3905 = vmatpush3.bf16.msra.mxu1 %v3996_v6 }
  0x2f   :  { %3928 = vmatprep.subr.bf16.mxu1 %v5063_v0 }
  0xfe   :  { %v103_v7 = vpop.f32.mrb[0].mxu0  ;;  %v152_v11 = vpop.f32.mrb[0].mxu1 }
  0xff   :  { %v158_v8 = vpack.c.bf16 %v103_v7, %v103_v7  ;;  %v3890_v9 = vpop.f32.mrb[1].mxu0  ;;  %v159_v13 = vpack.c.bf16 %v152_v11, %v152_v11  ;;  %v3896_v14 = vpop.f32.mrb[1].mxu1 }
 0x100   :  { %v106_v10 = vpop.f32.mrb[2].mxu0  ;;  %v155_v15 = vpop.f32.mrb[2].mxu1 }
 0x101   :  { %v3891_v12 = vpop.f32.mrb[3].mxu0  ;;  %3901 = vmatmul.mubr.msk.bf16.vlgmr.msra.gmra.mrb[4].mxu0 %vm65_vm1, %v158_v8  ;;  %v3897_v16 = vpop.f32.mrb[3].mxu1  ;;  %3907 = vmatmul.mubr.msk.bf16.vlgmr.msra.gmra.mrb[4].mxu1 %vm65_vm1, %v159_v13 }
 0x102   :  { %3924 = vmatprep.mubr.msk.bf16.mxu0 %vm4050_vm0, %v5063_v0  ;;  %3942 = vmatprep.mubr.msk.bf16.mxu1 %vm4050_vm0, %v5063_v0 }
 0x1d4   :  { %v203_v17 = vpop.f32.mrb[4].mxu0  ;;  %v252_v21 = vpop.f32.mrb[4].mxu1 }
 0x1d5   :  { %v3902_v18 = vpop.f32.mrb[5].mxu0  ;;  %v262_v19 = vpack.c.bf16 %v203_v17, %v203_v17  ;;  %v3908_v23 = vpop.f32.mrb[5].mxu1  ;;  %v263_v26 = vpack.c.bf16 %v252_v21, %v252_v21 }
 0x1d6   :  { %v206_v20 = vpop.f32.mrb[6].mxu0  ;;  %v255_v24 = vpop.f32.mrb[6].mxu1 }
 0x1d7   :  { %264 = vxpose.xlu0.c.b16.start.end [1/1] (short) (narrow) %v262_v19, 112  ;;  %v3903_v22 = vpop.f32.mrb[7].mxu0  ;;  %v3909_v25 = vpop.f32.mrb[7].mxu1 }
 0x1f0   :  { %280 = vxpose.xlu0.c.b16.start.end [1/1] (short) (narrow) %v263_v26, 112 }
 0x23d   :  { %v272_v27 = vpop.trf.xlu0 }
 0x23e   :  { %v296_v41 = vcombine.high %v272_v27, %v4053_v40  ;;  %v303_v47 = vrot.slane %v272_v27, %v4145_v42 }
 0x240   :  { %v310_v45 = vrot.slane %v296_v41, %v4145_v42  ;;  %v318_v54 = vrot.slane %v303_v47, %v4150_v46  ;;  %v311_v13 = vcombine.high %v303_v47, %v4053_v40 }
 0x241   :  { %v273_v28 = vpop.trf.xlu0 }
 0x242   :  { %v326_v51 = vcombine.high %v310_v45, %v4053_v40  ;;  %v401_v52 = vrot.slane %v273_v28, %v4145_v42  ;;  %v4163_v60 = vrot.slane %v310_v45, %v4150_v46  ;;  %v904_v4 = vshrl.u32 %v318_v54, 16 }
 0x243   :  { %v341_v15 = vcombine.high %v318_v54, %v4053_v40  ;;  %v394_v22 = vcombine.high %v273_v28, %v4053_v40  ;;  %v325_v26 = vrot.slane %v311_v13, %v4150_v46 }
 0x244   :  { %v4166_v61 = vrot.slane %v326_v51, %v4150_v46  ;;  %v4169_v62 = vrot.slane %v401_v52, %v4150_v46  ;;  %v409_v23 = vcombine.high %v401_v52, %v4053_v40 }
 0x245   :  { %v4136_v29 = vpop.trf.xlu0  ;;  %v408_v36 = vrot.slane %v394_v22, %v4145_v42  ;;  %v912_v41 = vshrl.u32 %v341_v15, 16  ;;  %v920_v52 = vshrl.u32 %v325_v26, 16 }
 0x246   :  { %v968_v9 = vshrl.u32 %v4169_v62, 16  ;;  %v4188_v11 = vcombine.high %v4166_v61, %v4053_v40  ;;  %v4209_v25 = vcombine.high %v4169_v62, %v4053_v40  ;;  %v4219_v37 = vrot.slane %v409_v23, %v4150_v46 }
 0x247   :  { %v424_v13 = vcombine.high %v408_v36, %v4053_v40 }
 0x248   :  { %v960_v24 = vshrl.u32 %v4188_v11, 16  ;;  %v976_v38 = vshrl.u32 %v4209_v25, 16  ;;  %v984_v51 = vshrl.u32 %v4219_v37, 16 }
 0x249   :  { %v4138_v30 = vpop.trf.xlu0 }
 0x24d   :  { %v4140_v34 = vpop.trf.xlu0 }
 0x251   :  { %v4142_v39 = vpop.trf.xlu0 }
 0x255   :  { %v4147_v44 = vpop.trf.xlu0 }
 0x259   :  { %v288_v48 = vpop.trf.xlu0 }
 0x25a   :  { %v345_v49 = vcombine.high %v288_v48, %v4053_v40  ;;  %v352_v50 = vrot.slane %v288_v48, %v4145_v42 }
 0x25c   :  { %v359_v53 = vrot.slane %v345_v49, %v4145_v42  ;;  %v367_v55 = vrot.slane %v352_v50, %v4150_v46  ;;  %v360_v6 = vcombine.high %v352_v50, %v4053_v40  ;;  %v4227_v50 = vrot.slane %v408_v36, %v4150_v46 }
 0x25d   :  { %v289_v56 = vpop.trf.xlu0 }
 0x25e   :  { %v375_v57 = vcombine.high %v359_v53, %v4053_v40  ;;  %v450_v58 = vrot.slane %v289_v56, %v4145_v42  ;;  %v902_v59 = vpack.i.b16 %v367_v55, %v318_v54  ;;  %v4172_v63 = vrot.slane %v359_v53, %v4150_v46 }
 0x25f   :  { %v905_v1 = vshrl.u32 %v367_v55, 16  ;;  %v390_v8 = vcombine.high %v367_v55, %v4053_v40  ;;  %v443_v14 = vcombine.high %v289_v56, %v4053_v40  ;;  %v374_v21 = vrot.slane %v360_v6, %v4150_v46 }
 0x260   :  { %v4175_v2 = vrot.slane %v375_v57, %v4150_v46  ;;  %v4178_v3 = vrot.slane %v450_v58, %v4150_v46  ;;  %1300 = vxpose.xlu1.c.b16.start.end [1/1] (short) (narrow) %v902_v59, 16  ;;  %v934_v5 = vpack.i.b16 %v4172_v63, %v4163_v60  ;;  %v458_v16 = vcombine.high %v450_v58, %v4053_v40 }
 0x261   :  { %v906_v7 = vpack.i.b16 %v905_v1, %v904_v4  ;;  %v910_v20 = vpack.i.b16 %v390_v8, %v341_v15  ;;  %v457_v27 = vrot.slane %v443_v14, %v4145_v42  ;;  %v918_v33 = vpack.i.b16 %v374_v21, %v325_v26 }
 0x262   :  { %1428 = vxpose.xlu0.c.b16.start.end [1/1] (short) (narrow) %v934_v5, 16  ;;  %v969_v10 = vshrl.u32 %v4178_v3, 16  ;;  %v4192_v12 = vcombine.high %v4175_v2, %v4053_v40  ;;  %v4201_v19 = vcombine.high %v4178_v3, %v4053_v40  ;;  %v4214_v31 = vrot.slane %v458_v16, %v4150_v46 }
 0x263   :  { %v913_v35 = vshrl.u32 %v390_v8, 16  ;;  %v4223_v43 = vrot.slane %v457_v27, %v4150_v46  ;;  %v921_v49 = vshrl.u32 %v374_v21, 16  ;;  %v4236_v57 = vcombine.high %v374_v21, %v4053_v40  ;;  %v290_v8 = vpop.trf.xlu0 }
 0x264   :  { %1316 = vxpose.xlu1.c.b16.start.end [1/1] (short) (narrow) %v906_v7, 16  ;;  %v970_v17 = vpack.i.b16 %v969_v10, %v968_v9  ;;  %v961_v18 = vshrl.u32 %v4192_v12, 16  ;;  %v977_v28 = vshrl.u32 %v4201_v19, 16  ;;  %v985_v47 = vshrl.u32 %v4214_v31, 16 }
 0x265   :  { %v914_v48 = vpack.i.b16 %v913_v35, %v912_v41  ;;  %v1001_v54 = vshrl.u32 %v4223_v43, 16  ;;  %v4233_v55 = vcombine.high %v4214_v31, %v4053_v40  ;;  %v922_v56 = vpack.i.b16 %v921_v49, %v920_v52 }
 0x266   :  { %1572 = vxpose.xlu0.c.b16.start.end [1/1] (short) (narrow) %v970_v17, 16  ;;  %v962_v32 = vpack.i.b16 %v961_v18, %v960_v24  ;;  %v978_v45 = vpack.i.b16 %v977_v28, %v976_v38  ;;  %v986_v53 = vpack.i.b16 %v985_v47, %v984_v51  ;;  %v1000_v58 = vshrl.u32 %v4227_v50, 16 }
 0x267   :  { %v4241_v59 = vcombine.high %v4219_v37, %v4053_v40  ;;  %v342_v1 = vcombine.high %v325_v26, %v4053_v40  ;;  %v473_v4 = vcombine.high %v457_v27, %v4053_v40  ;;  %v993_v6 = vshrl.u32 %v4233_v55, 16 }
 0x268   :  { %1332 = vxpose.xlu1.c.b16.start.end [1/1] (short) (narrow) %v910_v20, 16  ;;  %v1002_v5 = vpack.i.b16 %v1001_v54, %v1000_v58  ;;  %v4248_v7 = vcombine.high %v4223_v43, %v4053_v40  ;;  %v937_v10 = vshrl.u32 %v4172_v63, 16  ;;  %v4256_v15 = vcombine.high %v4227_v50, %v4053_v40 }
 0x269   :  { %v926_v9 = vpack.i.b16 %v4236_v57, %v342_v1  ;;  %v992_v14 = vshrl.u32 %v4241_v59, 16  ;;  %v936_v16 = vshrl.u32 %v4163_v60, 16  ;;  %v548_v17 = vrot.slane %v290_v8, %v4145_v42 }
 0x26a   :  { %1540 = vxpose.xlu0.c.b16.start.end [1/1] (short) (narrow) %v962_v32, 16  ;;  %v1009_v20 = vshrl.u32 %v4248_v7, 16  ;;  %v4262_v21 = vrot.slane %v473_v4, %v4150_v46  ;;  %v392_v23 = vcombine.high %v4172_v63, %v4053_v40  ;;  %v499_v24 = vrot.slane %v4136_v29, %v4145_v42 }
 0x26b   :  { %v994_v18 = vpack.i.b16 %v993_v6, %v992_v14  ;;  %v938_v22 = vpack.i.b16 %v937_v10, %v936_v16  ;;  %v1008_v26 = vshrl.u32 %v4256_v15, 16  ;;  %v4270_v27 = vrot.slane %v424_v13, %v4150_v46 }
 0x26c   :  { %1364 = vxpose.xlu1.c.b16.start.end [1/1] (short) (narrow) %v918_v33, 16  ;;  %v343_v32 = vcombine.high %v4163_v60, %v4053_v40  ;;  %v4275_v28 = vrot.slane %v548_v17, %v4150_v46  ;;  %v1017_v35 = vshrl.u32 %v4262_v21, 16  ;;  %v4279_v36 = vrot.slane %v499_v24, %v4150_v46 }
 0x26d   :  { %v1010_v33 = vpack.i.b16 %v1009_v20, %v1008_v26  ;;  %v1016_v38 = vshrl.u32 %v4270_v27, 16  ;;  %v4285_v60 = vcombine.high %v4262_v21, %v4053_v40  ;;  %v950_v47 = vpack.i.b16 %v4175_v2, %v4166_v61 }
 0x26e   :  { %1604 = vxpose.xlu0.c.b16.start.end [1/1] (short) (narrow) %v978_v45, 16  ;;  %v942_v63 = vpack.i.b16 %v392_v23, %v343_v32  ;;  %v1033_v45 = vshrl.u32 %v4275_v28, 16  ;;  %v4292_v49 = vcombine.high %v4270_v27, %v4053_v40  ;;  %v541_v51 = vcombine.high %v290_v8, %v4053_v40 }
 0x26f   :  { %v1018_v41 = vpack.i.b16 %v1017_v35, %v1016_v38  ;;  %v556_v52 = vcombine.high %v548_v17, %v4053_v40  ;;  %v1025_v54 = vshrl.u32 %v4285_v60, 16  ;;  %v966_v58 = vpack.i.b16 %v4178_v3, %v4169_v62 }
 0x270   :  { %1348 = vxpose.xlu1.c.b16.start.end [1/1] (short) (narrow) %v914_v48, 16  ;;  %v1032_v48 = vshrl.u32 %v4279_v36, 16  ;;  %v929_v4 = vshrl.u32 %v4236_v57, 16  ;;  %v507_v6 = vcombine.high %v499_v24, %v4053_v40  ;;  %v1024_v8 = vshrl.u32 %v4292_v49, 16 }
 0x271   :  { %v928_v10 = vshrl.u32 %v342_v1, 16  ;;  %v555_v13 = vrot.slane %v541_v51, %v4145_v42  ;;  %v4314_v62 = vrot.slane %v556_v52, %v4150_v46  ;;  %v945_v14 = vshrl.u32 %v392_v23, 16 }
 0x272   :  { %1636 = vxpose.xlu0.c.b16.start.end [1/1] (short) (narrow) %v986_v53, 16  ;;  %v1034_v53 = vpack.i.b16 %v1033_v45, %v1032_v48  ;;  %v1026_v3 = vpack.i.b16 %v1025_v54, %v1024_v8  ;;  %v4319_v17 = vrot.slane %v507_v6, %v4150_v46  ;;  %v944_v1 = vshrl.u32 %v343_v32, 16 }
 0x273   :  { %v4323_v20 = vrot.slane %v555_v13, %v4150_v46  ;;  %v1049_v24 = vshrl.u32 %v4314_v62, 16  ;;  %v571_v48 = vcombine.high %v555_v13, %v4053_v40  ;;  %v958_v54 = vpack.i.b16 %v4192_v12, %v4188_v11 }
 0x274   :  { %1380 = vxpose.xlu1.c.b16.start.end [1/1] (short) (narrow) %v922_v56, 16  ;;  %v4299_v56 = vcombine.high %v4275_v28, %v4053_v40  ;;  %v946_v26 = vpack.i.b16 %v945_v14, %v944_v1  ;;  %v1048_v35 = vshrl.u32 %v4319_v17, 16  ;;  %v974_v11 = vpack.i.b16 %v4201_v19, %v4209_v25 }
 0x275   :  { %v1065_v32 = vshrl.u32 %v4323_v20, 16  ;;  %v4346_v52 = vcombine.high %v4323_v20, %v4053_v40  ;;  %v4357_v6 = vrot.slane %v571_v48, %v4150_v46  ;;  %v597_v12 = vrot.slane %v4138_v30, %v4145_v42 }
 0x276   :  { %1700 = vxpose.xlu0.c.b16.start.end [1/1] (short) (narrow) %v1002_v5, 16  ;;  %v492_v5 = vcombine.high %v4136_v29, %v4053_v40  ;;  %v1041_v57 = vshrl.u32 %v4299_v56, 16  ;;  %v930_v29 = vpack.i.b16 %v929_v4, %v928_v10  ;;  %v1050_v38 = vpack.i.b16 %v1049_v24, %v1048_v35 }
 0x277   :  { %v1073_v13 = vshrl.u32 %v4346_v52, 16  ;;  %v4376_v19 = vrot.slane %v597_v12, %v4150_v46  ;;  %v4382_v24 = vcombine.high %v4357_v6, %v4053_v40 }
 0x278   :  { %1396 = vxpose.xlu1.c.b16.start.end [1/1] (short) (narrow) %v926_v9, 16  ;;  %v4310_v9 = vcombine.high %v4279_v36, %v4053_v40  ;;  %v506_v16 = vrot.slane %v492_v5, %v4145_v42 }
 0x279   :  { %v4406_v48 = vcombine.high %v4376_v19, %v4053_v40 }
 0x27a   :  { %1668 = vxpose.xlu0.c.b16.start.end [1/1] (short) (narrow) %v994_v18, 16  ;;  %v1040_v18 = vshrl.u32 %v4310_v9, 16  ;;  %v4328_v23 = vrot.slane %v506_v16, %v4150_v46 }
 0x27c   :  { %1444 = vxpose.xlu1.c.b16.start.end [1/1] (short) (narrow) %v938_v22, 16  ;;  %v1042_v22 = vpack.i.b16 %v1041_v57, %v1040_v18  ;;  %v4354_v5 = vcombine.high %v4328_v23, %v4053_v40  ;;  %v982_v18 = vpack.i.b16 %v4214_v31, %v4219_v37  ;;  %v1096_v31 = vshrl.u32 %v4376_v19, 16 }
 0x27e   :  { %1732 = vxpose.xlu0.c.b16.start.end [1/1] (short) (narrow) %v1010_v33, 16  ;;  %v953_v33 = vshrl.u32 %v4175_v2, 16  ;;  %v1064_v2 = vshrl.u32 %v4328_v23, 16 }
 0x280   :  { %1460 = vxpose.xlu1.c.b16.start.end [1/1] (short) (narrow) %v942_v63, 16  ;;  %v952_v63 = vshrl.u32 %v4166_v61, 16  ;;  %v1066_v51 = vpack.i.b16 %v1065_v32, %v1064_v2 }
 0x282   :  { %1764 = vxpose.xlu0.c.b16.start.end [1/1] (short) (narrow) %v1018_v41, 16  ;;  %v4335_v41 = vcombine.high %v4314_v62, %v4053_v40  ;;  %v954_v45 = vpack.i.b16 %v953_v33, %v952_v63 }
 0x284   :  { %1492 = vxpose.xlu1.c.b16.start.end [1/1] (short) (narrow) %v950_v47, 16  ;;  %v4340_v47 = vcombine.high %v4319_v17, %v4053_v40  ;;  %v1057_v61 = vshrl.u32 %v4335_v41, 16 }
 0x286   :  { %1828 = vxpose.xlu0.c.b16.start.end [1/1] (short) (narrow) %v1034_v53, 16  ;;  %v291_v53 = vpop.trf.xlu0  ;;  %v1056_v4 = vshrl.u32 %v4340_v47, 16 }
 0x287   :  { %v646_v8 = vrot.slane %v291_v53, %v4145_v42  ;;  %v639_v33 = vcombine.high %v291_v53, %v4053_v40 }
 0x288   :  { %1556 = vxpose.xlu1.c.b16.start.end [1/1] (short) (narrow) %v966_v58, 16  ;;  %v522_v58 = vcombine.high %v506_v16, %v4053_v40  ;;  %v1058_v10 = vpack.i.b16 %v1057_v61, %v1056_v4  ;;  %v1081_v16 = vshrl.u32 %v4357_v6, 16 }
 0x289   :  { %v654_v35 = vcombine.high %v646_v8, %v4053_v40 }
 0x28a   :  { %1796 = vxpose.xlu0.c.b16.start.end [1/1] (short) (narrow) %v1026_v3, 16  ;;  %v1072_v3 = vshrl.u32 %v4354_v5, 16  ;;  %v4367_v57 = vrot.slane %v522_v58, %v4150_v46  ;;  %v1104_v58 = vshrl.u32 %v4406_v48, 16 }
 0x28b   :  { %v4410_v61 = vrot.slane %v654_v35, %v4150_v46 }
 0x28c   :  { %1412 = vxpose.xlu1.c.b16.start.end [1/1] (short) (narrow) %v930_v29, 16  ;;  %v4370_v29 = vrot.slane %v646_v8, %v4150_v46  ;;  %v1074_v14 = vpack.i.b16 %v1073_v13, %v1072_v3  ;;  %v1080_v25 = vshrl.u32 %v4367_v57, 16  ;;  %v4389_v37 = vcombine.high %v4367_v57, %v4053_v40 }
 0x28d   :  { %v1014_v13 = vpack.i.b16 %v4262_v21, %v4270_v27  ;;  %v4433_v3 = vcombine.high %v4410_v61, %v4053_v40 }
 0x28e   :  { %1860 = vxpose.xlu0.c.b16.start.end [1/1] (short) (narrow) %v1042_v22, 16  ;;  %v1082_v1 = vpack.i.b16 %v1081_v16, %v1080_v25  ;;  %v1097_v22 = vshrl.u32 %v4370_v29, 16  ;;  %v4396_v32 = vcombine.high %v4370_v29, %v4053_v40  ;;  %v1088_v2 = vshrl.u32 %v4389_v37, 16 }
 0x28f   :  { %v1121_v25 = vshrl.u32 %v4433_v3, 16 }
 0x290   :  { %1476 = vxpose.xlu1.c.b16.start.end [1/1] (short) (narrow) %v946_v26, 16  ;;  %v998_v26 = vpack.i.b16 %v4223_v43, %v4227_v50  ;;  %v1098_v63 = vpack.i.b16 %v1097_v22, %v1096_v31  ;;  %v990_v43 = vpack.i.b16 %v4233_v55, %v4241_v59  ;;  %v590_v50 = vcombine.high %v4138_v30, %v4053_v40  ;;  %v292_v22 = vpop.trf.xlu0 }
 0x291   :  { %v1105_v55 = vshrl.u32 %v4396_v32, 16  ;;  %v1006_v30 = vpack.i.b16 %v4248_v7, %v4256_v15  ;;  %v744_v35 = vrot.slane %v292_v22, %v4145_v42 }
 0x292   :  { %1892 = vxpose.xlu0.c.b16.start.end [1/1] (short) (narrow) %v1050_v38, 16  ;;  %v1089_v38 = vshrl.u32 %v4382_v24, 16  ;;  %v604_v59 = vrot.slane %v590_v50, %v4145_v42 }
 0x293   :  { %v1106_v8 = vpack.i.b16 %v1105_v55, %v1104_v58 }
 0x294   :  { %1508 = vxpose.xlu1.c.b16.start.end [1/1] (short) (narrow) %v954_v45, 16  ;;  %v605_v45 = vcombine.high %v597_v12, %v4053_v40  ;;  %v1090_v53 = vpack.i.b16 %v1089_v38, %v1088_v2  ;;  %v4427_v7 = vrot.slane %v604_v59, %v4150_v46 }
 0x296   :  { %1956 = vxpose.xlu0.c.b16.start.end [1/1] (short) (narrow) %v1066_v51, 16  ;;  %v653_v51 = vrot.slane %v639_v33, %v4145_v42  ;;  %v1128_v21 = vshrl.u32 %v4427_v7, 16  ;;  %v4454_v31 = vcombine.high %v4427_v7, %v4053_v40 }
 0x298   :  { %1524 = vxpose.xlu1.c.b16.start.end [1/1] (short) (narrow) %v958_v54, 16  ;;  %v4417_v54 = vrot.slane %v605_v45, %v4150_v46  ;;  %v4421_v4 = vrot.slane %v653_v51, %v4150_v46  ;;  %v669_v16 = vcombine.high %v653_v51, %v4053_v40  ;;  %v4470_v45 = vrot.slane %v744_v35, %v4150_v46 }
 0x29a   :  { %1924 = vxpose.xlu0.c.b16.start.end [1/1] (short) (narrow) %v1058_v10, 16  ;;  %v1113_v10 = vshrl.u32 %v4410_v61, 16  ;;  %v1112_v15 = vshrl.u32 %v4417_v54, 16  ;;  %v1129_v12 = vshrl.u32 %v4421_v4, 16  ;;  %v4440_v27 = vcombine.high %v4417_v54, %v4053_v40 }
 0x29b   :  { %v4457_v33 = vrot.slane %v669_v16, %v4150_v46 }
 0x29c   :  { %1588 = vxpose.xlu1.c.b16.start.end [1/1] (short) (narrow) %v974_v11, 16  ;;  %v1114_v11 = vpack.i.b16 %v1113_v10, %v1112_v15  ;;  %v737_v10 = vcombine.high %v292_v22, %v4053_v40 }
 0x29d   :  { %v1145_v51 = vshrl.u32 %v4457_v33, 16  ;;  %v4484_v58 = vcombine.high %v4457_v33, %v4053_v40 }
 0x29e   :  { %1988 = vxpose.xlu0.c.b16.start.end [1/1] (short) (narrow) %v1074_v14, 16  ;;  %v1030_v14 = vpack.i.b16 %v4275_v28, %v4279_v36  ;;  %v1022_v28 = vpack.i.b16 %v4285_v60, %v4292_v49  ;;  %v620_v36 = vcombine.high %v604_v59, %v4053_v40  ;;  %v1038_v60 = vpack.i.b16 %v4299_v56, %v4310_v9  ;;  %v4478_v9 = vpop.trf.xlu0 }
 0x29f   :  { %v695_v49 = vrot.slane %v4140_v34, %v4145_v42  ;;  %v1161_v59 = vshrl.u32 %v4470_v45, 16  ;;  %v751_v22 = vrot.slane %v737_v10, %v4145_v42 }
 0x2a0   :  { %1620 = vxpose.xlu1.c.b16.start.end [1/1] (short) (narrow) %v982_v18, 16  ;;  %v1130_v18 = vpack.i.b16 %v1129_v12, %v1128_v21  ;;  %v4467_v50 = vrot.slane %v620_v36, %v4150_v46  ;;  %v1153_v12 = vshrl.u32 %v4484_v58, 16  ;;  %v688_v21 = vcombine.high %v4140_v34, %v4053_v40 }
 0x2a1   :  { %v4476_v56 = vrot.slane %v695_v49, %v4150_v46  ;;  %v703_v16 = vcombine.high %v695_v49, %v4053_v40 }
 0x2a2   :  { %2020 = vxpose.xlu0.c.b16.start.end [1/1] (short) (narrow) %v1082_v1, 16  ;;  %v4446_v1 = vcombine.high %v4421_v4, %v4053_v40  ;;  %v1144_v55 = vshrl.u32 %v4467_v50, 16  ;;  %v4495_v15 = vpop.trf.xlu0 }
 0x2a4   :  { %1684 = vxpose.xlu1.c.b16.start.end [1/1] (short) (narrow) %v998_v26, 16  ;;  %v1120_v26 = vshrl.u32 %v4440_v27, 16  ;;  %v1137_v38 = vshrl.u32 %v4446_v1, 16  ;;  %v1134_v0 = vpack.i.b16 %v4446_v1, %v4454_v31 }
 0x2a6   :  { %2084 = vxpose.xlu0.c.b16.start.end [1/1] (short) (narrow) %v1098_v63, 16  ;;  %v1122_v63 = vpack.i.b16 %v1121_v25, %v1120_v26  ;;  %v4512_v25 = vcombine.high %v4476_v56, %v4053_v40  ;;  %v1070_v26 = vpack.i.b16 %v4346_v52, %v4354_v5  ;;  %v1078_v52 = vpack.i.b16 %v4357_v6, %v4367_v57 }
 0x2a7   :  { %v1094_v6 = vpack.i.b16 %v4370_v29, %v4376_v19  ;;  %v1086_v19 = vpack.i.b16 %v4382_v24, %v4389_v37 }
 0x2a8   :  { %1652 = vxpose.xlu1.c.b16.start.end [1/1] (short) (narrow) %v990_v43, 16  ;;  %v1136_v43 = vshrl.u32 %v4454_v31, 16 }
 0x2aa   :  { %2052 = vxpose.xlu0.c.b16.start.end [1/1] (short) (narrow) %v1090_v53, 16  ;;  %v1138_v2 = vpack.i.b16 %v1137_v38, %v1136_v43  ;;  %v1046_v53 = vpack.i.b16 %v4314_v62, %v4319_v17  ;;  %v1160_v62 = vshrl.u32 %v4476_v56, 16  ;;  %v4491_v17 = vcombine.high %v4467_v50, %v4053_v40 }
 0x2ab   :  { %v1168_v38 = vshrl.u32 %v4512_v25, 16 }
 0x2ac   :  { %1716 = vxpose.xlu1.c.b16.start.end [1/1] (short) (narrow) %v1006_v30, 16  ;;  %v1146_v30 = vpack.i.b16 %v1145_v51, %v1144_v55 }
 0x2ae   :  { %2116 = vxpose.xlu0.c.b16.start.end [1/1] (short) (narrow) %v1106_v8, 16  ;;  %v1062_v8 = vpack.i.b16 %v4323_v20, %v4328_v23  ;;  %v4500_v20 = vcombine.high %v4470_v45, %v4053_v40 }
 0x2b0   :  { %1748 = vxpose.xlu1.c.b16.start.end [1/1] (short) (narrow) %v1014_v13, 16  ;;  %v752_v13 = vcombine.high %v744_v35, %v4053_v40  ;;  %v702_v35 = vrot.slane %v688_v21, %v4145_v42 }
 0x2b2   :  { %2148 = vxpose.xlu0.c.b16.start.end [1/1] (short) (narrow) %v1114_v11, 16  ;;  %v1162_v11 = vpack.i.b16 %v1161_v59, %v1160_v62  ;;  %v4541_v5 = vrot.slane %v702_v35, %v4150_v46 }
 0x2b4   :  { %1812 = vxpose.xlu1.c.b16.start.end [1/1] (short) (narrow) %v1030_v14, 16  ;;  %v1054_v14 = vpack.i.b16 %v4335_v41, %v4340_v47  ;;  %v1169_v41 = vshrl.u32 %v4500_v20, 16  ;;  %v1192_v57 = vshrl.u32 %v4541_v5, 16 }
 0x2b6   :  { %2212 = vxpose.xlu0.c.b16.start.end [1/1] (short) (narrow) %v1130_v18, 16  ;;  %v1152_v18 = vshrl.u32 %v4491_v17, 16  ;;  %v1170_v49 = vpack.i.b16 %v1169_v41, %v1168_v38  ;;  %v842_v41 = vrot.slane %v4478_v9, %v4145_v42 }
 0x2b8   :  { %1780 = vxpose.xlu1.c.b16.start.end [1/1] (short) (narrow) %v1022_v28, 16  ;;  %v4516_v28 = vrot.slane %v752_v13, %v4150_v46  ;;  %v1154_v36 = vpack.i.b16 %v1153_v12, %v1152_v18  ;;  %v767_v13 = vcombine.high %v751_v22, %v4053_v40 }
 0x2ba   :  { %2180 = vxpose.xlu0.c.b16.start.end [1/1] (short) (narrow) %v1122_v63, 16  ;;  %v4527_v63 = vrot.slane %v703_v16, %v4150_v46  ;;  %v1177_v43 = vshrl.u32 %v4516_v28, 16  ;;  %v4547_v59 = vcombine.high %v4516_v28, %v4053_v40  ;;  %v718_v16 = vcombine.high %v702_v35, %v4053_v40 }
 0x2bb   :  { %v1102_v35 = vpack.i.b16 %v4396_v32, %v4406_v48  ;;  %v1110_v32 = vpack.i.b16 %v4410_v61, %v4417_v54  ;;  %v1126_v61 = vpack.i.b16 %v4421_v4, %v4427_v7 }
 0x2bc   :  { %1844 = vxpose.xlu1.c.b16.start.end [1/1] (short) (narrow) %v1038_v60, 16  ;;  %v4531_v60 = vrot.slane %v751_v22, %v4150_v46  ;;  %v4558_v10 = vcombine.high %v4527_v63, %v4053_v40  ;;  %v1185_v12 = vshrl.u32 %v4547_v59, 16  ;;  %v4576_v22 = vcombine.high %v4541_v5, %v4053_v40 }
 0x2be   :  { %2244 = vxpose.xlu0.c.b16.start.end [1/1] (short) (narrow) %v1138_v2, 16  ;;  %v1184_v18 = vshrl.u32 %v4558_v10, 16 }
 0x2c0   :  { %1876 = vxpose.xlu1.c.b16.start.end [1/1] (short) (narrow) %v1046_v53, 16  ;;  %v1176_v53 = vshrl.u32 %v4527_v63, 16 }
 0x2c2   :  { %2276 = vxpose.xlu0.c.b16.start.end [1/1] (short) (narrow) %v1146_v30, 16  ;;  %v1178_v55 = vpack.i.b16 %v1177_v43, %v1176_v53  ;;  %v1193_v30 = vshrl.u32 %v4531_v60, 16  ;;  %v1200_v43 = vshrl.u32 %v4576_v22, 16  ;;  %v4595_v53 = vrot.slane %v842_v41, %v4150_v46 }
 0x2c4   :  { %1940 = vxpose.xlu1.c.b16.start.end [1/1] (short) (narrow) %v1062_v8, 16 }
 0x2c6   :  { %v4502_v23 = vpop.trf.xlu1  ;;  %2340 = vxpose.xlu0.c.b16.start.end [1/1] (short) (narrow) %v1162_v11, 16  ;;  %v1194_v11 = vpack.i.b16 %v1193_v30, %v1192_v57 }
 0x2c8   :  { %1908 = vxpose.xlu1.c.b16.start.end [1/1] (short) (narrow) %v1054_v14, 16  ;;  %v4519_v47 = vpop.trf.xlu0  ;;  %v4564_v14 = vcombine.high %v4531_v60, %v4053_v40 }
 0x2ca   :  { %v4521_v34 = vpop.trf.xlu1  ;;  %2308 = vxpose.xlu0.c.b16.start.end [1/1] (short) (narrow) %v1154_v36, 16  ;;  %v4579_v36 = vrot.slane %v767_v13, %v4150_v46  ;;  %v1201_v38 = vshrl.u32 %v4564_v14, 16 }
 0x2cc   :  { %1972 = vxpose.xlu1.c.b16.start.end [1/1] (short) (narrow) %v1070_v26, 16  ;;  %v4534_v2 = vpop.trf.xlu0  ;;  %v1186_v26 = vpack.i.b16 %v1185_v12, %v1184_v18  ;;  %v1209_v30 = vshrl.u32 %v4579_v36, 16  ;;  %v1225_v12 = vshrl.u32 %v4595_v53, 16 }
 0x2ce   :  { %v4536_v51 = vpop.trf.xlu1  ;;  %2372 = vxpose.xlu0.c.b16.start.end [1/1] (short) (narrow) %v1170_v49, 16  ;;  %v793_v49 = vrot.slane %v4142_v39, %v4145_v42 }
 0x2d0   :  { %2004 = vxpose.xlu1.c.b16.start.end [1/1] (short) (narrow) %v1078_v52, 16  ;;  %v4549_v8 = vpop.trf.xlu0  ;;  %v4592_v52 = vrot.slane %v718_v16, %v4150_v46  ;;  %v4605_v48 = vrot.slane %v793_v49, %v4150_v46 }
 0x2d2   :  { %v4551_v62 = vpop.trf.xlu1  ;;  %2404 = vxpose.xlu0.c.b16.start.end [1/1] (short) (narrow) %v1178_v55, 16  ;;  %v1202_v55 = vpack.i.b16 %v1201_v38, %v1200_v43  ;;  %v1208_v13 = vshrl.u32 %v4592_v52, 16  ;;  %v1224_v54 = vshrl.u32 %v4605_v48, 16  ;;  %v835_v38 = vcombine.high %v4478_v9, %v4053_v40 }
 0x2d3   :  { %v801_v9 = vcombine.high %v793_v49, %v4053_v40 }
 0x2d4   :  { %2068 = vxpose.xlu1.c.b16.start.end [1/1] (short) (narrow) %v1094_v6, 16  ;;  %v4566_v21 = vpop.trf.xlu0  ;;  %v1226_v43 = vpack.i.b16 %v1225_v12, %v1224_v54  ;;  %v849_v12 = vrot.slane %v835_v38, %v4145_v42 }
 0x2d5   :  { %v4655_v38 = vrot.slane %v801_v9, %v4150_v46 }
 0x2d6   :  { %v4568_v29 = vpop.trf.xlu1  ;;  %2468 = vxpose.xlu0.c.b16.start.end [1/1] (short) (narrow) %v1194_v11, 16  ;;  %v1210_v11 = vpack.i.b16 %v1209_v30, %v1208_v13  ;;  %v4628_v30 = vcombine.high %v4595_v53, %v4053_v40  ;;  %v786_v13 = vcombine.high %v4142_v39, %v4053_v40 }
 0x2d7   :  { %v1240_v9 = vshrl.u32 %v4655_v38, 16 }
 0x2d8   :  { %2036 = vxpose.xlu1.c.b16.start.end [1/1] (short) (narrow) %v1086_v19, 16  ;;  %v1644_v24 = vpop.trf.xlu0  ;;  %v4611_v19 = vcombine.high %v4579_v36, %v4053_v40 }
 0x2d9   :  { %v3050_v39 = vcombine.low %v4534_v2, %v1644_v24 }
 0x2da   :  { %v4584_v37 = vpop.trf.xlu1  ;;  %2436 = vxpose.xlu0.c.b16.start.end [1/1] (short) (narrow) %v1186_v26, 16  ;;  %v4620_v26 = vcombine.high %v4592_v52, %v4053_v40 }
 0x2dc   :  { %2100 = vxpose.xlu1.c.b16.start.end [1/1] (short) (narrow) %v1102_v35, 16  ;;  %v4598_v6 = vpop.trf.xlu0  ;;  %v850_v35 = vcombine.high %v842_v41, %v4053_v40  ;;  %v1216_v41 = vshrl.u32 %v4620_v26, 16 }
 0x2de   :  { %v4600_v57 = vpop.trf.xlu1  ;;  %2500 = vxpose.xlu0.c.b16.start.end [1/1] (short) (narrow) %v1202_v55, 16  ;;  %v1217_v55 = vshrl.u32 %v4611_v19, 16 }
 0x2e0   :  { %2132 = vxpose.xlu1.c.b16.start.end [1/1] (short) (narrow) %v1110_v32, 16  ;;  %v1676_v16 = vpop.trf.xlu0  ;;  %v1118_v32 = vpack.i.b16 %v4433_v3, %v4440_v27  ;;  %v1218_v54 = vpack.i.b16 %v1217_v55, %v1216_v41  ;;  %v1233_v3 = vshrl.u32 %v4628_v30, 16  ;;  %v4659_v55 = vrot.slane %v849_v12, %v4150_v46 }
 0x2e2   :  { %v4613_v18 = vpop.trf.xlu1  ;;  %2532 = vxpose.xlu0.c.b16.start.end [1/1] (short) (narrow) %v1210_v11, 16  ;;  %v4640_v11 = vcombine.high %v4605_v48, %v4053_v40 }
 0x2e4   :  { %2196 = vxpose.xlu1.c.b16.start.end [1/1] (short) (narrow) %v1126_v61, 16  ;;  %v1740_v4 = vpop.trf.xlu0  ;;  %v4644_v61 = vrot.slane %v850_v35, %v4150_v46  ;;  %v1232_v35 = vshrl.u32 %v4640_v11, 16 }
 0x2e6   :  { %v4630_v7 = vpop.trf.xlu1  ;;  %2596 = vxpose.xlu0.c.b16.start.end [1/1] (short) (narrow) %v1226_v43, 16  ;;  %v3058_v43 = vcombine.low %v4566_v21, %v1676_v16  ;;  %v1234_v2 = vpack.i.b16 %v1233_v3, %v1232_v35  ;;  %v1241_v24 = vshrl.u32 %v4644_v61, 16  ;;  %v3057_v21 = vrot.slane %v3050_v39, %v4145_v42 }
 0x2e7   :  { %v1142_v16 = vpack.i.b16 %v4457_v33, %v4467_v50  ;;  %v1257_v3 = vshrl.u32 %v4659_v55, 16  ;;  %v4678_v39 = vcombine.high %v4644_v61, %v4053_v40  ;;  %v1158_v50 = vpack.i.b16 %v4470_v45, %v4476_v56 }
 0x2e8   :  { %2164 = vxpose.xlu1.c.b16.start.end [1/1] (short) (narrow) %v1118_v32, 16  ;;  %v1772_v27 = vpop.trf.xlu0  ;;  %v800_v32 = vrot.slane %v786_v13, %v4145_v42  ;;  %v3065_v1 = vrot.slane %v3058_v43, %v4145_v42 }
 0x2e9   :  { %v3066_v13 = vcombine.low %v4598_v6, %v1772_v27 }
 0x2ea   :  { %v4648_v49 = vpop.trf.xlu1  ;;  %2564 = vxpose.xlu0.c.b16.start.end [1/1] (short) (narrow) %v1218_v54, 16  ;;  %v1242_v54 = vpack.i.b16 %v1241_v24, %v1240_v9  ;;  %v3082_v35 = vcombine.low %v3057_v21, %v3065_v1  ;;  %v865_v24 = vcombine.high %v849_v12, %v4053_v40  ;;  %v4692_v21 = vcombine.high %v4659_v55, %v4053_v40 }
 0x2eb   :  { %v3073_v33 = vrot.slane %v3066_v13, %v4145_v42  ;;  %v816_v1 = vcombine.high %v800_v32, %v4053_v40 }
 0x2ec   :  { %2228 = vxpose.xlu1.c.b16.start.end [1/1] (short) (narrow) %v1134_v0, 16  ;;  %v4662_v41 = vpop.trf.xlu0  ;;  %v4672_v0 = vrot.slane %v800_v32, %v4150_v46  ;;  %v4700_v9 = vrot.slane %v3082_v35, %v4150_v46 }
 0x2ed   :  { %v4721_v35 = vrot.slane %v816_v1, %v4150_v46 }
 0x2ee   :  { %v4666_v31 = vpop.trf.xlu1  ;;  %2628 = vxpose.xlu0.c.b16.start.end [1/1] (short) (narrow) %v1234_v2, 16  ;;  %v1256_v27 = vshrl.u32 %v4672_v0, 16  ;;  %v4686_v2 = vcombine.high %v4655_v38, %v4053_v40 }
 0x2ef   :  { %5065 = vst [vmem:[#allocation8_spill] sm:$0xff] %v4666_v31 }
 0x2f0   :  { %2260 = vxpose.xlu1.c.b16.start.end [1/1] (short) (narrow) %v1142_v16, 16  ;;  %v1804_v43 = vpop.trf.xlu0  ;;  %v1258_v56 = vpack.i.b16 %v1257_v3, %v1256_v27  ;;  %v1248_v32 = vshrl.u32 %v4686_v2, 16  ;;  %v2908_v3 = vcombine.low %v4536_v51, %v4600_v57  ;;  %v2900_v27 = vcombine.low %v4502_v23, %v4551_v62 }
 0x2f1   :  { %v3074_v6 = vcombine.low %v1740_v4, %v1804_v43  ;;  %v1249_v4 = vshrl.u32 %v4678_v39, 16 }
 0x2f2   :  { %v1420_v31 = vpop.trf.xlu1  ;;  %2660 = vxpose.xlu0.c.b16.start.end [1/1] (short) (narrow) %v1242_v54, 16  ;;  %v1150_v54 = vpack.i.b16 %v4484_v58, %v4491_v17  ;;  %v1265_v17 = vshrl.u32 %v4692_v21, 16 }
 0x2f3   :  { %v3081_v16 = vrot.slane %v3074_v6, %v4145_v42  ;;  %v2958_v45 = vcombine.low %v4568_v29, %v1420_v31  ;;  %v2950_v29 = vcombine.low %v4521_v34, %v4584_v37  ;;  %v4712_v31 = vrot.slane %v865_v24, %v4150_v46 }
 0x2f4   :  { %2324 = vxpose.xlu1.c.b16.start.end [1/1] (short) (narrow) %v1158_v50, 16  ;;  %v4697_v13 = vpop.trf.xlu0  ;;  %v4706_v50 = vcombine.high %v4672_v0, %v4053_v40  ;;  %v1166_v24 = vpack.i.b16 %v4500_v20, %v4512_v25  ;;  %v2916_v20 = vcombine.low %v4519_v47, %v4648_v49  ;;  %v4757_v47 = vcombine.high %v4721_v35, %v4053_v40 }
 0x2f5   :  { %v3090_v43 = vcombine.low %v3073_v33, %v3081_v16  ;;  %v2965_v34 = vrot.slane %v2958_v45, %v4145_v42  ;;  %v1250_v33 = vpack.i.b16 %v1249_v4, %v1248_v32  ;;  %v2957_v1 = vrot.slane %v2950_v29, %v4145_v42 }
 0x2f6   :  { %v1484_v12 = vpop.trf.xlu1  ;;  %2724 = vxpose.xlu0.c.b16.start.end [1/1] (short) (narrow) %v1258_v56, 16  ;;  %v1264_v16 = vshrl.u32 %v4706_v50, 16  ;;  %v2915_v45 = vrot.slane %v2908_v3, %v4145_v42  ;;  %v1273_v23 = vshrl.u32 %v4712_v31, 16  ;;  %v4742_v62 = vcombine.high %v4712_v31, %v4053_v40 }
 0x2f7   :  { %v4717_v58 = vrot.slane %v3090_v43, %v4150_v46  ;;  %v2974_v37 = vcombine.low %v1484_v12, %v4549_v8  ;;  %v2982_v25 = vcombine.low %v2957_v1, %v2965_v34  ;;  %v1174_v29 = vpack.i.b16 %v4516_v28, %v4527_v63 }
 0x2f8   :  { %2292 = vxpose.xlu1.c.b16.start.end [1/1] (short) (narrow) %v1150_v54, 16  ;;  %v4725_v6 = vpop.trf.xlu0  ;;  %v1266_v56 = vpack.i.b16 %v1265_v17, %v1264_v16  ;;  %v2907_v54 = vrot.slane %v2900_v27, %v4145_v42  ;;  %v1272_v32 = vshrl.u32 %v4721_v35, 16  ;;  %v4761_v49 = vrot.slane %v4495_v15, %v4150_v46 }
 0x2f9   :  { %v4731_v57 = vcombine.high %v4700_v9, %v4717_v58  ;;  %v2981_v4 = vrot.slane %v2974_v37, %v4145_v42  ;;  %v2923_v28 = vrot.slane %v2916_v20, %v4145_v42  ;;  %v2989_v63 = vrot.slane %v2982_v25, %v4150_v46 }
 0x2fa   :  { %v1516_v51 = vpop.trf.xlu1  ;;  %2692 = vxpose.xlu0.c.b16.start.end [1/1] (short) (narrow) %v1250_v33, 16  ;;  %v2932_v34 = vcombine.low %v2907_v54, %v2915_v45  ;;  %v1274_v37 = vpack.i.b16 %v1273_v23, %v1272_v32  ;;  %v1281_v33 = vshrl.u32 %v4742_v62, 16  ;;  %v1190_v16 = vpack.i.b16 %v4531_v60, %v4541_v5 }
 0x2fb   :  { %v2966_v8 = vcombine.low %v4613_v18, %v1516_v51  ;;  %v1280_v45 = vshrl.u32 %v4757_v47, 16  ;;  %v1289_v23 = vshrl.u32 %v4761_v49, 16 }
 0x2fc   :  { %2356 = vxpose.xlu1.c.b16.start.end [1/1] (short) (narrow) %v1166_v24, 16  ;;  %v4748_v18 = vpop.trf.xlu0  ;;  %v4770_v24 = vrot.slane %v4147_v44, %v4150_v46  ;;  %v2939_v44 = vrot.slane %v2932_v34, %v4150_v46 }
 0x2fd   :  { %v2973_v12 = vrot.slane %v2966_v8, %v4145_v42 }
 0x2fe   :  { %v1532_v43 = vpop.trf.xlu1  ;;  %2756 = vxpose.xlu0.c.b16.start.end [1/1] (short) (narrow) %v1266_v56, 16  ;;  %v4781_v56 = vcombine.high %v4761_v49, %v4053_v40  ;;  %v1288_v54 = vshrl.u32 %v4770_v24, 16 }
 0x2ff   :  { %v2990_v3 = vcombine.low %v2973_v12, %v2981_v4  ;;  %v2924_v17 = vcombine.low %v4630_v7, %v1532_v43  ;;  %v1282_v4 = vpack.i.b16 %v1281_v33, %v1280_v45  ;;  %v1182_v12 = vpack.i.b16 %v4547_v59, %v4558_v10 }
 0x300   :  { %2388 = vxpose.xlu1.c.b16.start.end [1/1] (short) (narrow) %v1174_v29, 16  ;;  %v1932_v51 = vpop.trf.xlu0  ;;  %v4793_v43 = vcombine.high %v4770_v24, %v4053_v40  ;;  %v1297_v34 = vshrl.u32 %v4781_v56, 16  ;;  %v5066_v45 = vmov 0.0  }
 0x301   :  { %v2997_v7 = vrot.slane %v2990_v3, %v4150_v46  ;;  %v2931_v27 = vrot.slane %v2924_v17, %v4145_v42  ;;  %v1290_v3 = vpack.i.b16 %v1289_v23, %v1288_v54  ;;  %v1198_v17 = vpack.i.b16 %v4564_v14, %v4576_v22 }
 0x302   :  { %v4772_v15 = vpop.trf.xlu1  ;;  %2788 = vxpose.xlu0.c.b16.start.end [1/1] (short) (narrow) %v1274_v37, 16  ;;  %v1296_v22 = vshrl.u32 %v4793_v43, 16 }
 0x303   :  { %v4776_v1 = vcombine.high %v2989_v63, %v2997_v7  ;;  %v2940_v8 = vcombine.low %v2923_v28, %v2931_v27  ;;  %v2998_v20 = vcombine.low %v2989_v63, %v2997_v7  ;;  %v3150_v63 = vcombine.low %v4662_v41, %v4725_v6 }
 0x304   :  { %2452 = vxpose.xlu1.c.b16.start.end [1/1] (short) (narrow) %v1190_v16, 16  ;;  %v1996_v60 = vpop.trf.xlu0  ;;  %v3158_v27 = vcombine.low %v4697_v13, %v1932_v51 }
 0x305   :  { %v2947_v25 = vrot.slane %v2940_v8, %v4150_v46  ;;  %v3523_v59 = vshrl.u32 %v2998_v20, 16  ;;  %v3531_v8 = vshrl.u32 %v4776_v1, 16  ;;  %v3157_v13 = vrot.slane %v3150_v63, %v4145_v42 }
 0x306   :  { %v4786_v5 = vpop.trf.xlu1  ;;  %2820 = vxpose.xlu0.c.b16.start.end [1/1] (short) (narrow) %v1282_v4, 16  ;;  %v3165_v6 = vrot.slane %v3158_v27, %v4145_v42  ;;  %v1230_v63 = vpack.i.b16 %v4628_v30, %v4640_v11 }
 0x307   :  { %v2948_v29 = vcombine.low %v2939_v44, %v2947_v25  ;;  %v4795_v32 = vcombine.high %v2939_v44, %v2947_v25  ;;  %v1298_v44 = vpack.i.b16 %v1297_v34, %v1296_v22 }
 0x308   :  { %2420 = vxpose.xlu1.c.b16.start.end [1/1] (short) (narrow) %v1182_v12, 16  ;;  %v2028_v10 = vpop.trf.xlu0  ;;  %v3182_v12 = vcombine.low %v3157_v13, %v3165_v6 }
 0x309   :  { %v3520_v37 = vpack.i.b16 %v2998_v20, %v2948_v29  ;;  %v3522_v33 = vshrl.u32 %v2948_v29, 16  ;;  %v3528_v28 = vpack.i.b16 %v4776_v1, %v4795_v32  ;;  %v3530_v16 = vshrl.u32 %v4795_v32, 16 }
 0x30a   :  { %v1692_v7 = vpop.trf.xlu1  ;;  %2852 = vxpose.xlu0.c.b16.start.end [1/1] (short) (narrow) %v1290_v3, 16  ;;  %v1206_v20 = vpack.i.b16 %v4579_v36, %v4592_v52  ;;  %v3166_v25 = vcombine.low %v4748_v18, %v2028_v10  ;;  %v1222_v3 = vpack.i.b16 %v4595_v53, %v4605_v48  ;;  %v4824_v36 = vrot.slane %v3182_v12, %v4150_v46 }
 0x30b   :  { %3911 = vmatpush3.bf16.msra.mxu0 %v3520_v37  ;;  %v3524_v14 = vpack.i.b16 %v3523_v59, %v3522_v33  ;;  %v4809_v23 = vpack.i.b16 %v3531_v8, %v3530_v16  ;;  %v1214_v18 = vpack.i.b16 %v4611_v19, %v4620_v26  ;;  %v5067_v19 = vld [vmem:[#allocation8_spill] sm:$0xff]  ;;  %v1246_v12 = vpack.i.b16 %v4678_v39, %v4686_v2 }
 0x30c   :  { %2484 = vxpose.xlu1.c.b16.start.end [1/1] (short) (narrow) %v1198_v17, 16  ;;  %3912 = vmatprep.subr.bf16.mxu0 %v5066_v45  ;;  %v4811_v41 = vpop.trf.xlu0  ;;  %v3173_v29 = vrot.slane %v3166_v25, %v4145_v42  ;;  %v3000_v26 = vcombine.low %v5067_v19, %v4786_v5 }
 0x30d   :  { %3929 = vmatpush3.bf16.msra.mxu1 %v3524_v14 }
 0x30e   :  { %v1660_v51 = vpop.trf.xlu1  ;;  %3930 = vmatprep.subr.bf16.mxu1 %v5066_v45  ;;  %2884 = vxpose.xlu0.c.b16.start.end [1/1] (short) (narrow) %v1298_v44, 16  ;;  %v3007_v22 = vrot.slane %v3000_v26, %v4145_v42 }
 0x30f   :  { %v3008_v53 = vcombine.low %v4772_v15, %v1660_v51  ;;  %v1238_v15 = vpack.i.b16 %v4644_v61, %v4655_v38  ;;  %v1254_v51 = vpack.i.b16 %v4659_v55, %v4672_v0  ;;  %v1262_v55 = vpack.i.b16 %v4692_v21, %v4706_v50 }
 0x310   :  { %2516 = vxpose.xlu1.c.b16.start.end [1/1] (short) (narrow) %v1206_v20, 16  ;;  %v2060_v4 = vpop.trf.xlu0  ;;  %v3098_v20 = vcombine.low %v4700_v9, %v4717_v58  ;;  %v3547_v58 = vshrl.u32 %v4731_v57, 16 }
 0x311   :  { %v3174_v17 = vcombine.low %v1996_v60, %v2060_v4  ;;  %v3015_v27 = vrot.slane %v3008_v53, %v4145_v42 }
 0x312   :  { %v1724_v54 = vpop.trf.xlu1 }
 0x313   :  { %v3181_v34 = vrot.slane %v3174_v17, %v4145_v42  ;;  %v3032_v13 = vcombine.low %v3007_v22, %v3015_v27  ;;  %v3539_v17 = vshrl.u32 %v3098_v20, 16 }
 0x314   :  { %2580 = vxpose.xlu1.c.b16.start.end [1/1] (short) (narrow) %v1222_v3, 16  ;;  %v2124_v37 = vpop.trf.xlu0 }
 0x315   :  { %v3190_v33 = vcombine.low %v3173_v29, %v3181_v34  ;;  %v3039_v61 = vrot.slane %v3032_v13, %v4150_v46 }
 0x316   :  { %v1756_v52 = vpop.trf.xlu1 }
 0x317   :  { %v4829_v59 = vrot.slane %v3190_v33, %v4150_v46  ;;  %3992 = vset.pattern.permute.xlu0 %v4053_v40  ;;  %v3016_v16 = vcombine.low %v1692_v7, %v1756_v52 }
 0x318   :  { %2548 = vxpose.xlu1.c.b16.start.end [1/1] (short) (narrow) %v1214_v18, 16  ;;  %v2156_v48 = vpop.trf.xlu0 }
 0x319   :  { %v4837_v10 = vcombine.high %v4824_v36, %v4829_v59  ;;  %v3023_v6 = vrot.slane %v3016_v16, %v4145_v42  ;;  %v3250_v34 = vcombine.low %v4811_v41, %v2156_v48  ;;  %v1270_v48 = vpack.i.b16 %v4712_v31, %v4721_v35 }
 0x31a   :  { %v4833_v60 = vpop.trf.xlu1  ;;  %v1286_v35 = vpack.i.b16 %v4761_v49, %v4770_v24 }
 0x31b   :  { %v3257_v53 = vrot.slane %v3250_v34, %v4145_v42 }
 0x31c   :  { %2612 = vxpose.xlu1.c.b16.start.end [1/1] (short) (narrow) %v1230_v63, 16  ;;  %v2220_v8 = vpop.trf.xlu0 }
 0x31e   :  { %v1788_v14 = vpop.trf.xlu1 }
 0x31f   :  { %v3024_v44 = vcombine.low %v1724_v54, %v1788_v14  ;;  %v1278_v14 = vpack.i.b16 %v4742_v62, %v4757_v47  ;;  %v1294_v62 = vpack.i.b16 %v4781_v56, %v4793_v43 }
 0x320   :  { %2644 = vxpose.xlu1.c.b16.start.end [1/1] (short) (narrow) %v1238_v15, 16  ;;  %v2188_v11 = vpop.trf.xlu0 }
 0x321   :  { %v3031_v30 = vrot.slane %v3024_v44, %v4145_v42  ;;  %v3258_v18 = vcombine.low %v2124_v37, %v2188_v11 }
 0x322   :  { %v1852_v5 = vpop.trf.xlu1 }
 0x323   :  { %v3040_v7 = vcombine.low %v3023_v6, %v3031_v30  ;;  %v3265_v41 = vrot.slane %v3258_v18, %v4145_v42 }
 0x324   :  { %2708 = vxpose.xlu1.c.b16.start.end [1/1] (short) (narrow) %v1254_v51, 16  ;;  %v2252_v25 = vpop.trf.xlu0 }
 0x325   :  { %v3047_v38 = vrot.slane %v3040_v7, %v4150_v46  ;;  %v3282_v26 = vcombine.low %v3257_v53, %v3265_v41  ;;  %v3820_v53 = vld [vmem:[%s5061_s4] sm:$0xff] }
 0x326   :  { %v1884_v4 = vpop.trf.xlu1 }
 0x327   :  { %v3048_v54 = vcombine.low %v3039_v61, %v3047_v38  ;;  %v4857_v29 = vcombine.high %v3039_v61, %v3047_v38  ;;  %v4881_v44 = vrot.slane %v3282_v26, %v4150_v46  ;;  %v3100_v47 = vcombine.low %v4833_v60, %v1884_v4 }
 0x328   :  { %2676 = vxpose.xlu1.c.b16.start.end [1/1] (short) (narrow) %v1246_v12, 16  ;;  %v2284_v9 = vpop.trf.xlu0  ;;  %v3198_v4 = vcombine.low %v4824_v36, %v4829_v59  ;;  %v3563_v36 = vshrl.u32 %v4837_v10, 16 }
 0x329   :  { %v3536_v0 = vpack.i.b16 %v3098_v20, %v3048_v54  ;;  %v3538_v3 = vshrl.u32 %v3048_v54, 16  ;;  %v3544_v39 = vpack.i.b16 %v4731_v57, %v4857_v29  ;;  %v3546_v2 = vshrl.u32 %v4857_v29, 16 }
 0x32a   :  { %v1948_v52 = vpop.trf.xlu1  ;;  %v3266_v63 = vcombine.low %v2220_v8, %v2284_v9  ;;  %v3107_v20 = vrot.slane %v3100_v47, %v4145_v42  ;;  %v3555_v34 = vshrl.u32 %v3198_v4, 16 }
 0x32b   :  { %3913 = vmatpush3.bf16.msra.mxu0 %v3536_v0  ;;  %v3540_v33 = vpack.i.b16 %v3539_v17, %v3538_v3  ;;  %v4867_v21 = vpack.i.b16 %v3547_v58, %v3546_v2 }
 0x32c   :  { %2740 = vxpose.xlu1.c.b16.start.end [1/1] (short) (narrow) %v1262_v55, 16  ;;  %3914 = vmatprep.subr.bf16.mxu0 %v5066_v45  ;;  %v4869_v50 = vpop.trf.xlu0  ;;  %v3273_v16 = vrot.slane %v3266_v63, %v4145_v42 }
 0x32d   :  { %3931 = vmatpush3.bf16.msra.mxu1 %v3540_v33 }
 0x32e   :  { %v1916_v37 = vpop.trf.xlu1  ;;  %3932 = vmatprep.subr.bf16.mxu1 %v5066_v45 }
 0x32f   :  { %v3108_v6 = vcombine.low %v1852_v5, %v1916_v37 }
 0x330   :  { %2772 = vxpose.xlu1.c.b16.start.end [1/1] (short) (narrow) %v1270_v48, 16  ;;  %v2316_v19 = vpop.trf.xlu0 }
 0x331   :  { %v3274_v15 = vcombine.low %v2252_v25, %v2316_v19  ;;  %v3115_v7 = vrot.slane %v3108_v6, %v4145_v42 }
 0x332   :  { %v1980_v27 = vpop.trf.xlu1 }
 0x333   :  { %v3281_v22 = vrot.slane %v3274_v15, %v4145_v42  ;;  %v3132_v5 = vcombine.low %v3107_v20, %v3115_v7 }
 0x334   :  { %2804 = vxpose.xlu1.c.b16.start.end [1/1] (short) (narrow) %v1278_v14, 16  ;;  %v4892_v51 = vpop.trf.xlu0 }
 0x335   :  { %v3290_v8 = vcombine.low %v3273_v16, %v3281_v22  ;;  %v3139_v12 = vrot.slane %v3132_v5, %v4150_v46 }
 0x336   :  { %v2012_v31 = vpop.trf.xlu1 }
 0x337   :  { %v3297_v13 = vrot.slane %v3290_v8, %v4150_v46  ;;  %v3116_v49 = vcombine.low %v1948_v52, %v2012_v31 }
 0x338   :  { %2836 = vxpose.xlu1.c.b16.start.end [1/1] (short) (narrow) %v1286_v35, 16  ;;  %v4899_v43 = vpop.trf.xlu0 }
 0x339   :  { %v4887_v11 = vcombine.high %v4881_v44, %v3297_v13  ;;  %v3123_v38 = vrot.slane %v3116_v49, %v4145_v42  ;;  %v3298_v20 = vcombine.low %v4881_v44, %v3297_v13 }
 0x33a   :  { %v2076_v30 = vpop.trf.xlu1 }
 0x33b   :  { %v3579_v13 = vshrl.u32 %v4887_v11, 16 }
 0x33c   :  { %2868 = vxpose.xlu1.c.b16.start.end [1/1] (short) (narrow) %v1294_v62, 16  ;;  %v4907_v17 = vpop.trf.xlu0 }
 0x33e   :  { %v2044_v24 = vpop.trf.xlu1 }
 0x33f   :  { %v3124_v61 = vcombine.low %v1980_v27, %v2044_v24 }
 0x340   :  { %3991 = vset.pattern.permute.xlu1 %v4053_v40  ;;  %v2444_v41 = vpop.trf.xlu0 }
 0x341   :  { %v3131_v25 = vrot.slane %v3124_v61, %v4145_v42  ;;  %3823 = vperm.xlu1 %3991, %v3820_v53  }
 0x342   :  { %v2108_v56 = vpop.trf.xlu1 }
 0x343   :  { %v3140_v60 = vcombine.low %v3123_v38, %v3131_v25 }
 0x344   :  { %v2508_v63 = vpop.trf.xlu0 }
 0x345   :  { %v3147_v54 = vrot.slane %v3140_v60, %v4150_v46 }
 0x346   :  { %v2140_v55 = vpop.trf.xlu1 }
 0x347   :  { %v3148_v0 = vcombine.low %v3139_v12, %v3147_v54  ;;  %v4905_v3 = vcombine.high %v3139_v12, %v3147_v54  ;;  %v3200_v14 = vcombine.low %v2076_v30, %v2140_v55  ;;  %v3571_v12 = vshrl.u32 %v3298_v20, 16 }
 0x348   :  { %v2540_v27 = vpop.trf.xlu0 }
 0x349   :  { %v3552_v9 = vpack.i.b16 %v3198_v4, %v3148_v0  ;;  %v3554_v58 = vshrl.u32 %v3148_v0, 16  ;;  %v3560_v52 = vpack.i.b16 %v4837_v10, %v4905_v3  ;;  %v3562_v2 = vshrl.u32 %v4905_v3, 16 }
 0x34a   :  { %v2204_v18 = vpop.trf.xlu1  ;;  %v3207_v35 = vrot.slane %v3200_v14, %v4145_v42  ;;  %v3366_v53 = vcombine.low %v4907_v17, %v2540_v27 }
 0x34b   :  { %3915 = vmatpush3.bf16.msra.mxu0 %v3552_v9  ;;  %v3556_v59 = vpack.i.b16 %v3555_v34, %v3554_v58  ;;  %v4914_v33 = vpack.i.b16 %v3563_v36, %v3562_v2  ;;  %v3350_v36 = vcombine.low %v4869_v50, %v4899_v43 }
 0x34c   :  { %3916 = vmatprep.subr.bf16.mxu0 %v5066_v45  ;;  %v4922_v6 = vpop.trf.xlu0 }
 0x34d   :  { %3933 = vmatpush3.bf16.msra.mxu1 %v3556_v59  ;;  %v3358_v59 = vcombine.low %v4892_v51, %v2444_v41 }
 0x34e   :  { %v2172_v37 = vpop.trf.xlu1  ;;  %3934 = vmatprep.subr.bf16.mxu1 %v5066_v45 }
 0x34f   :  { %v3208_v26 = vcombine.low %v2108_v56, %v2172_v37  ;;  %v3365_v14 = vrot.slane %v3358_v59, %v4145_v42 }
 0x350   :  { %v2572_v5 = vpop.trf.xlu0 }
 0x351   :  { %v3215_v15 = vrot.slane %v3208_v26, %v4145_v42  ;;  %v3374_v37 = vcombine.low %v2508_v63, %v2572_v5  ;;  %v3357_v26 = vrot.slane %v3350_v36, %v4145_v42 }
 0x352   :  { %v2236_v48 = vpop.trf.xlu1 }
 0x353   :  { %v3232_v62 = vcombine.low %v3207_v35, %v3215_v15  ;;  %v3373_v15 = vrot.slane %v3366_v53, %v4145_v42 }
 0x354   :  { %v4933_v55 = vpop.trf.xlu0 }
 0x355   :  { %v3239_v30 = vrot.slane %v3232_v62, %v4150_v46  ;;  %v3382_v62 = vcombine.low %v3357_v26, %v3365_v14 }
 0x356   :  { %v2268_v19 = vpop.trf.xlu1 }
 0x357   :  { %v3216_v22 = vcombine.low %v2204_v18, %v2268_v19 }
 0x358   :  { %v2668_v18 = vpop.trf.xlu0 }
 0x359   :  { %v3223_v47 = vrot.slane %v3216_v22, %v4145_v42  ;;  %v3381_v22 = vrot.slane %v3374_v37, %v4145_v42  ;;  %v3450_v59 = vcombine.low %v4922_v6, %v2668_v18 }
 0x35a   :  { %v2332_v16 = vpop.trf.xlu1 }
 0x35b   :  { %v3390_v43 = vcombine.low %v3373_v15, %v3381_v22  ;;  %v3457_v14 = vrot.slane %v3450_v59, %v4145_v42 }
 0x35e   :  { %v2300_v31 = vpop.trf.xlu1 }
 0x35f   :  { %v3224_v8 = vcombine.low %v2236_v48, %v2300_v31  ;;  %v2732_v48 = vpop.trf.xlu0 }
 0x361   :  { %v3231_v7 = vrot.slane %v3224_v8, %v4145_v42 }
 0x362   :  { %v2364_v49 = vpop.trf.xlu1 }
 0x363   :  { %v3240_v24 = vcombine.low %v3223_v47, %v3231_v7  ;;  %v2700_v50 = vpop.trf.xlu0  ;;  %v4952_v47 = vrot.slane %v3382_v62, %v4150_v46  ;;  %v4955_v7 = vrot.slane %v3390_v43, %v4150_v46 }
 0x364   :  { %v3458_v53 = vcombine.low %v4933_v55, %v2700_v50 }
 0x365   :  { %v3247_v61 = vrot.slane %v3240_v24, %v4150_v46  ;;  %v3398_v5 = vcombine.low %v4952_v47, %v4955_v7  ;;  %v3399_v32 = vcombine.high %v4952_v47, %v4955_v7 }
 0x366   :  { %v2396_v38 = vpop.trf.xlu1  ;;  %v3465_v15 = vrot.slane %v3458_v53, %v4145_v42 }
 0x367   :  { %v3248_v25 = vcombine.low %v3239_v30, %v3247_v61  ;;  %v4929_v56 = vcombine.high %v3239_v30, %v3247_v61  ;;  %v3300_v8 = vcombine.low %v2332_v16, %v2396_v38 }
 0x369   :  { %v3568_v60 = vpack.i.b16 %v3298_v20, %v3248_v25  ;;  %v3570_v4 = vshrl.u32 %v3248_v25, 16  ;;  %v3576_v54 = vpack.i.b16 %v4887_v11, %v4929_v56  ;;  %v3578_v44 = vshrl.u32 %v4929_v56, 16  ;;  %v2764_v20 = vpop.trf.xlu0 }
 0x36a   :  { %v2460_v0 = vpop.trf.xlu1  ;;  %v3307_v63 = vrot.slane %v3300_v8, %v4145_v42 }
 0x36b   :  { %3917 = vmatpush3.bf16.msra.mxu0 %v3568_v60  ;;  %v3572_v9 = vpack.i.b16 %v3571_v12, %v3570_v4  ;;  %v4938_v58 = vpack.i.b16 %v3579_v13, %v3578_v44  ;;  %v3587_v13 = vshrl.u32 %v3398_v5, 16 }
 0x36c   :  { %3918 = vmatprep.subr.bf16.mxu0 %v5066_v45 }
 0x36d   :  { %3935 = vmatpush3.bf16.msra.mxu1 %v3572_v9  ;;  %v2796_v12 = vpop.trf.xlu0 }
 0x36e   :  { %v2428_v34 = vpop.trf.xlu1  ;;  %3936 = vmatprep.subr.bf16.mxu1 %v5066_v45  ;;  %v3466_v37 = vcombine.low %v2732_v48, %v2796_v12 }
 0x36f   :  { %v3308_v31 = vcombine.low %v2364_v49, %v2428_v34 }
 0x370   :  { %v3473_v22 = vrot.slane %v3466_v37, %v4145_v42 }
 0x371   :  { %v3315_v51 = vrot.slane %v3308_v31, %v4145_v42 }
 0x372   :  { %v2492_v2 = vpop.trf.xlu1 }
 0x373   :  { %v3332_v24 = vcombine.low %v3307_v63, %v3315_v51 }
 0x375   :  { %v4962_v38 = vrot.slane %v3332_v24, %v4150_v46 }
 0x376   :  { %v2524_v19 = vpop.trf.xlu1 }
 0x377   :  { %v3316_v17 = vcombine.low %v2460_v0, %v2524_v19 }
 0x379   :  { %v3323_v49 = vrot.slane %v3316_v17, %v4145_v42  ;;  %v3482_v17 = vcombine.low %v3457_v14, %v3465_v15  ;;  %v258_v14 = vld [vmem:[%s5060_s3] sm:$0xf]  ;;  %v259_v15 = vld [vmem:[%s5060_s3 + $0x4] sm:$0xf] }
 0x37a   :  { %v2588_v35 = vpop.trf.xlu1 }
 0x37b   :  { %v3489_v63 = vrot.slane %v3482_v17, %v4150_v46 }
 0x37e   :  { %v2556_v41 = vpop.trf.xlu1 }
 0x37f   :  { %v3324_v27 = vcombine.low %v2492_v2, %v2556_v41  ;;  %v2828_v2 = vpop.trf.xlu0 }
 0x380   :  { %v3474_v19 = vcombine.low %v2764_v20, %v2828_v2 }
 0x381   :  { %v3331_v16 = vrot.slane %v3324_v27, %v4145_v42 }
 0x382   :  { %v2620_v30 = vpop.trf.xlu1  ;;  %v3481_v31 = vrot.slane %v3474_v19, %v4145_v42 }
 0x383   :  { %v3340_v61 = vcombine.low %v3323_v49, %v3331_v16  ;;  %v2860_v43 = vpop.trf.xlu0 }
 0x384   :  { %v3490_v41 = vcombine.low %v3473_v22, %v3481_v31  ;;  %v261_v22 = vld [vmem:[%s5060_s3 + $0xc] sm:$0xf] }
 0x385   :  { %v4965_v25 = vrot.slane %v3340_v61, %v4150_v46 }
 0x386   :  { %v2652_v60 = vpop.trf.xlu1  ;;  %v3497_v24 = vrot.slane %v3490_v41, %v4150_v46 }
 0x387   :  { %v3348_v4 = vcombine.low %v4962_v38, %v4965_v25  ;;  %v3400_v51 = vcombine.low %v2588_v35, %v2652_v60  ;;  %v2892_v27 = vpop.trf.xlu0  ;;  %v3349_v1 = vcombine.high %v4962_v38, %v4965_v25  ;;  %v260_v38 = vld [vmem:[%s5060_s3 + $0x8] sm:$0xf] }
 0x388   :  { %v3509_v61 = vcombine.low %v2860_v43, %v2892_v27  ;;  %v3499_v10 = vcombine.high %v3489_v63, %v3497_v24 }
 0x389   :  { %v3584_v0 = vpack.i.b16 %v3398_v5, %v3348_v4  ;;  %v3586_v44 = vshrl.u32 %v3348_v4, 16  ;;  %v3407_v48 = vrot.slane %v3400_v51, %v4145_v42  ;;  %v3498_v5 = vcombine.low %v3489_v63, %v3497_v24 }
 0x38a   :  { %v2716_v9 = vpop.trf.xlu1  ;;  %v3592_v29 = vpack.i.b16 %v3399_v32, %v3349_v1  ;;  %v3611_v56 = vshrl.u32 %v3499_v10, 16 }
 0x38b   :  { %3919 = vmatpush3.bf16.msra.mxu0 %v3584_v0  ;;  %v3588_v34 = vpack.i.b16 %v3587_v13, %v3586_v44  ;;  %v3516_v44 = vrot.slane %v3509_v61, %v4150_v46 }
 0x38c   :  { %3920 = vmatprep.subr.bf16.mxu0 %v5066_v45 }
 0x38d   :  { %3937 = vmatpush3.bf16.msra.mxu1 %v3588_v34 }
 0x38e   :  { %v2684_v36 = vpop.trf.xlu1  ;;  %3938 = vmatprep.subr.bf16.mxu1 %v5066_v45 }
 0x38f   :  { %v3408_v8 = vcombine.low %v2620_v30, %v2684_v36  ;;  %v3603_v36 = vshrl.u32 %v3498_v5, 16 }
 0x391   :  { %v3415_v6 = vrot.slane %v3408_v8, %v4145_v42 }
 0x392   :  { %v2748_v26 = vpop.trf.xlu1 }
 0x393   :  { %v3432_v49 = vcombine.low %v3407_v48, %v3415_v6 }
 0x395   :  { %v3439_v60 = vrot.slane %v3432_v49, %v4150_v46 }
 0x396   :  { %v2780_v62 = vpop.trf.xlu1 }
 0x397   :  { %v3416_v55 = vcombine.low %v2716_v9, %v2780_v62 }
 0x399   :  { %v3423_v16 = vrot.slane %v3416_v55, %v4145_v42 }
 0x39a   :  { %v2812_v18 = vpop.trf.xlu1 }
 0x39b   :  { %v3424_v50 = vcombine.low %v2748_v26, %v2812_v18 }
 0x39d   :  { %v3431_v20 = vrot.slane %v3424_v50, %v4145_v42  ;;  %v3618_v42 = vshrl.u32 %v3516_v44, 16 }
 0x39e   :  { %v2844_v35 = vpop.trf.xlu1 }
 0x39f   :  { %v3440_v30 = vcombine.low %v3423_v16, %v3431_v20 }
 0x3a1   :  { %v3447_v4 = vrot.slane %v3440_v30, %v4150_v46 }
 0x3a2   :  { %v2876_v12 = vpop.trf.xlu1 }
 0x3a3   :  { %v3448_v0 = vcombine.low %v3439_v60, %v3447_v4  ;;  %v3500_v13 = vcombine.low %v2844_v35, %v2876_v12  ;;  %v3449_v57 = vcombine.high %v3439_v60, %v3447_v4 }
 0x3a5   :  { %v3507_v9 = vrot.slane %v3500_v13, %v4150_v46  ;;  %v3600_v34 = vpack.i.b16 %v3498_v5, %v3448_v0  ;;  %v3602_v2 = vshrl.u32 %v3448_v0, 16 }
 0x3a7   :  { %v3617_v59 = vshrl.u32 %v3507_v9, 16  ;;  %3921 = vmatpush3.bf16.msra.mxu0 %v3600_v34  ;;  %v3604_v53 = vpack.i.b16 %v3603_v36, %v3602_v2  ;;  %v3616_v37 = vpack.i.b16 %v3516_v44, %v3507_v9 }
 0x3a8   :  { %3922 = vmatprep.subr.bf16.mxu0 %v5066_v45 }
 0x3a9   :  { %3939 = vmatpush3.bf16.msra.mxu1 %v3604_v53  ;;  %v3632_v19 = vsel %vm3630_vm2, %v3616_v37, 0  ;;  %v3619_v26 = vpack.i.b16 %v3618_v42, %v3617_v59 }
 0x3aa   :  { %3940 = vmatprep.subr.bf16.mxu1 %v5066_v45 }
 0x3ab   :  { %3923 = vmatpush3.bf16.msra.mxu0 %v3632_v19  ;;  %v3678_v46 = vsel %vm3630_vm2, %v3619_v26, 0 }
 0x3ac   :  { %3946 = vmatprep.subr.bf16.mxu0 %v5066_v45 }
 0x3ad   :  { %3941 = vmatpush3.bf16.msra.mxu1 %v3678_v46 }
 0x3ae   :  { %3925 = vmatmul.mubr.msk.bf16.vlgmr.msra.gmra.mrb[8].mxu0 %vm3626_vm3, %v258_v14  ;;  %3964 = vmatprep.subr.bf16.mxu1 %v5066_v45 }
 0x3af   :  { %3947 = vmatpush3.bf16.msra.mxu0 %v3528_v28  ;;  %3960 = vmatprep.mubr.msk.bf16.mxu0 %vm4050_vm0, %v5066_v45  ;;  %v3594_v28 = vshrl.u32 %v3349_v1, 16 }
 0x3b0   :  { %3943 = vmatmul.mubr.msk.bf16.vlgmr.msra.gmra.mrb[8].mxu1 %vm3626_vm3, %v259_v15  ;;  %3948 = vmatprep.subr.bf16.mxu0 %v5066_v45 }
 0x3b1   :  { %3965 = vmatpush3.bf16.msra.mxu1 %v4809_v23  ;;  %3978 = vmatprep.mubr.msk.bf16.mxu1 %vm4050_vm0, %v5066_v45  ;;  %v3508_v23 = vcombine.high %v3507_v9, %v4053_v40 }
 0x3b2   :  { %3966 = vmatprep.subr.bf16.mxu1 %v5066_v45 }
 0x3b3   :  { %3949 = vmatpush3.bf16.msra.mxu0 %v3544_v39  ;;  %v3595_v39 = vshrl.u32 %v3399_v32, 16  ;;  %v3623_v11 = vshrl.u32 %v3508_v23, 16 }
 0x3b4   :  { %3950 = vmatprep.subr.bf16.mxu0 %v5066_v45 }
 0x3b5   :  { %3967 = vmatpush3.bf16.msra.mxu1 %v4867_v21  ;;  %v3517_v21 = vcombine.high %v3516_v44, %v4053_v40  ;;  %v3596_v3 = vpack.i.b16 %v3595_v39, %v3594_v28 }
 0x3b6   :  { %3968 = vmatprep.subr.bf16.mxu1 %v5066_v45 }
 0x3b7   :  { %3951 = vmatpush3.bf16.msra.mxu0 %v3560_v52  ;;  %v3610_v52 = vshrl.u32 %v3449_v57, 16  ;;  %v3624_v47 = vshrl.u32 %v3517_v21, 16 }
 0x3b8   :  { %3952 = vmatprep.subr.bf16.mxu0 %v5066_v45 }
 0x3b9   :  { %3969 = vmatpush3.bf16.msra.mxu1 %v4914_v33  ;;  %v3608_v33 = vpack.i.b16 %v3499_v10, %v3449_v57  ;;  %v3625_v40 = vpack.i.b16 %v3624_v47, %v3623_v11 }
 0x3ba   :  { %3970 = vmatprep.subr.bf16.mxu1 %v5066_v45 }
 0x3bb   :  { %3953 = vmatpush3.bf16.msra.mxu0 %v3576_v54  ;;  %v3622_v54 = vpack.i.b16 %v3517_v21, %v3508_v23  ;;  %v3770_v25 = vsel %vm3630_vm2, %v3625_v40, 0 }
 0x3bc   :  { %3954 = vmatprep.subr.bf16.mxu0 %v5066_v45 }
 0x3bd   :  { %3971 = vmatpush3.bf16.msra.mxu1 %v4938_v58  ;;  %v3612_v58 = vpack.i.b16 %v3611_v56, %v3610_v52  ;;  %v3724_v7 = vsel %vm3630_vm2, %v3622_v54, 0 }
 0x3be   :  { %3972 = vmatprep.subr.bf16.mxu1 %v5066_v45 }
 0x3bf   :  { %3955 = vmatpush3.bf16.msra.mxu0 %v3592_v29 }
 0x3c0   :  { %3956 = vmatprep.subr.bf16.mxu0 %v5066_v45  ;;  %v3824_v27 = vpop.permute.xlu1 %3823 }
 0x3c1   :  { %3973 = vmatpush3.bf16.msra.mxu1 %v3596_v3 }
 0x3c2   :  { %3974 = vmatprep.subr.bf16.mxu1 %v5066_v45 }
 0x3c3   :  { %3957 = vmatpush3.bf16.msra.mxu0 %v3608_v33 }
 0x3c4   :  { %3958 = vmatprep.subr.bf16.mxu0 %v5066_v45 }
 0x3c5   :  { %3975 = vmatpush3.bf16.msra.mxu1 %v3612_v58 }
 0x3c6   :  { %3976 = vmatprep.subr.bf16.mxu1 %v5066_v45 }
 0x3c7   :  { %3959 = vmatpush3.bf16.msra.mxu0 %v3724_v7 }
 0x3c9   :  { %3977 = vmatpush3.bf16.msra.mxu1 %v3770_v25 }
 0x3ca   :  { %3961 = vmatmul.mubr.msk.bf16.vlgmr.msra.gmra.mrb[12].mxu0 %vm3626_vm3, %v260_v38 }
 0x3cc   :  { %3979 = vmatmul.mubr.msk.bf16.vlgmr.msra.gmra.mrb[12].mxu1 %vm3626_vm3, %v261_v22 }
 0x481   :  { %v3668_v31 = vpop.f32.mrb[8].mxu0 }
 0x482   :  { %v3813_v45 = vsel %vm3812_vm4, %v3668_v31, 0.0  ;;  %v3926_v8 = vpop.f32.mrb[9].mxu0 }
 0x483   :  { %v3671_v62 = vpop.f32.mrb[10].mxu0  ;;  %v3714_v43 = vpop.f32.mrb[8].mxu1 }
 0x484   :  { %v3814_v51 = vsel %vm3812_vm4, %v3714_v43, 0.0  ;;  %v3927_v17 = vpop.f32.mrb[11].mxu0  ;;  %v3944_v41 = vpop.f32.mrb[9].mxu1 }
 0x485   :  { %v3815_v6 = vadd.f32 %v3814_v51, %v3813_v45  ;;  %v3717_v55 = vpop.f32.mrb[10].mxu1 }
 0x486   :  { %v3945_v18 = vpop.f32.mrb[11].mxu1 }
 0x49d   :  { %v3760_v48 = vpop.f32.mrb[12].mxu0 }
 0x49e   :  { %v3816_v50 = vsel %vm3812_vm4, %v3760_v48, 0.0  ;;  %v3962_v63 = vpop.f32.mrb[13].mxu0 }
 0x49f   :  { %v3817_v24 = vadd.f32 %v3816_v50, %v3815_v6  ;;  %v3763_v49 = vpop.f32.mrb[14].mxu0  ;;  %v3806_v16 = vpop.f32.mrb[12].mxu1 }
 0x4a0   :  { %v3818_v20 = vsel %vm3812_vm4, %v3806_v16, 0.0  ;;  %v3963_v35 = vpop.f32.mrb[15].mxu0  ;;  %v3980_v30 = vpop.f32.mrb[13].mxu1 }
 0x4a1   :  { %v3819_v61 = vadd.f32 %v3818_v20, %v3817_v24  ;;  %v3809_v5 = vpop.f32.mrb[14].mxu1 }
 0x4a2   :  { %v3981_v60 = vpop.f32.mrb[15].mxu1 }
 0x4a3   :  { %v3826_v4 = vadd.f32 %v3824_v27, %v3819_v61 }
 0x4a5   :  { %3827 = vst.msk [vmem:[%s5062_s5] sm:$0xff] %vm3812_vm4, %v3826_v4 }
 0x4a6   :  { %3832 = vsyncpa [#allocation3], 1 }
 0x4a7   :  { %3833 = vsyncpa [#allocation5], 1 }

</bundles_post_ra>
